<compile_context>
chip_gen: v7x
topology: tpu7x:2x2x1
jax: 0.10.0
libtpu: 0.0.40
codegen_flags: <defaults>
</compile_context>

<pallas_src>
import jax
import jax.numpy as jnp
from jax.experimental import pallas as pl
from jax.experimental.pallas import tpu as pltpu


_BACKBONE_SLOPE = 0.1   # backboneNetwork uses nn.LeakyReLU(0.1)
_PRED_SLOPE = 0.01      # prediction_net uses nn.LeakyReLU() (default slope 0.01)


def _leaky(h, slope):
    return jnp.where(h >= 0, h, h * slope)


def _linear3d(h, w_t, b):
    # h: (Bb, T, Fin), w_t: (Fin, Fout) (pre-transposed), b: (1, Fout)
    bb, t, fin = h.shape
    fout = w_t.shape[1]
    out = jnp.dot(h.reshape(bb * t, fin), w_t,
                  preferred_element_type=jnp.float32)         # MXU
    return out.reshape(bb, t, fout) + b


def _smarter_attention_kernel(
    x_ref,                      # (Bb, T, D)
    bn_t_ref,                   # (6, T)   rows: [s1,h1,s2,h2,s3,h3]
    w1_ref, b1_ref,             # (D, N),   (1, N)
    w2_ref, b2_ref,             # (N, N),   (1, N)
    w3_ref, b3_ref,             # (N, 2N),  (1, 2N)
    w4_ref, b4_ref,             # (2N, 2N), (1, 2N)
    wwh_ref, wwc_ref, bw_ref,   # (2N, 2N), (2N, 2N), (1, 2N)
    wv_ref, bv_ref,             # (1, 2N),  (1, 1)
    bn_p_ref,                   # (4, 2N)  rows: [sp1,hp1,sp2,hp2]
    wp1_ref, bp1_ref,           # (2N, 2N), (1, 2N)
    wp2_ref, bp2_ref,           # (2N, out),(1, out)
    y_ref,                      # (Bb, out)
):
    f32 = jnp.float32
    x = x_ref[...]                                            # (Bb, T, D)

    # getMaskByFill: time steps whose feature vector is not all-zero.
    mask = jnp.sum((x != 0).astype(f32), axis=-1) > 0.0       # (Bb, T) bool
    mask_f = mask.astype(f32)

    bn_t = bn_t_ref[...]

    def bn_time(h, row):
        # eval-mode BatchNorm1d(T): per-time-channel affine, broadcast over (B, D)
        return h * bn_t[row][None, :, None] + bn_t[row + 1][None, :, None]

    # ---- backbone (all matmuls on MXU) ----
    h = bn_time(x.astype(f32), 0)
    h = _leaky(_linear3d(h, w1_ref[...], b1_ref[...]), _BACKBONE_SLOPE)
    h = bn_time(h, 2)
    h = _leaky(_linear3d(h, w2_ref[...], b2_ref[...]), _BACKBONE_SLOPE)
    h = bn_time(h, 4)
    h = _leaky(_linear3d(h, w3_ref[...], b3_ref[...]), _BACKBONE_SLOPE)
    h = _leaky(_linear3d(h, w4_ref[...], b4_ref[...]), _BACKBONE_SLOPE)   # (Bb,T,2N)

    # ---- masked mean context over T (tiny sublane reduce) ----
    denom = jnp.sum(mask_f, axis=1, keepdims=True) + 1e-10                # (Bb, 1)
    h_ctx = jnp.sum(h * mask_f[:, :, None], axis=1) / denom               # (Bb, 2N)

    # ---- additive attention score: v(tanh(W [h ; ctx])) ----
    pre = _linear3d(h, wwh_ref[...], bw_ref[...])                         # (Bb,T,2N)
    ctx_term = jnp.dot(h_ctx, wwc_ref[...],
                       preferred_element_type=f32)                        # (Bb, 2N)
    act = jnp.tanh(pre + ctx_term[:, None, :])                            # (Bb,T,2N)
    # v-projection: small epilogue (2N lanes) reduced to a lane-dense (Bb, T).
    scores = jnp.sum(act * wv_ref[...][None, :, :], axis=-1) + bv_ref[...]  # (Bb, T)

    # ---- ApplyAttention: masked softmax over T, then weighted sum ----
    scores = jnp.where(mask, scores, -1000.0)
    m = jnp.max(scores, axis=1, keepdims=True)
    e = jnp.exp(scores - m)
    weights = e / jnp.sum(e, axis=1, keepdims=True)                       # (Bb, T)
    final_ctx = jnp.sum(h * weights[:, :, None], axis=1)                  # (Bb, 2N)

    # ---- prediction net ----
    bn_p = bn_p_ref[...]
    z = final_ctx * bn_p[0] + bn_p[1]
    z = _leaky(jnp.dot(z, wp1_ref[...], preferred_element_type=f32)
               + bp1_ref[...], _PRED_SLOPE)
    z = z * bn_p[2] + bn_p[3]
    y = jnp.dot(z, wp2_ref[...], preferred_element_type=f32) + bp2_ref[...]
    y_ref[...] = y.astype(y_ref.dtype)


def _pick_block_b(B, T, D, two_n, budget_bytes=4 * 1024 * 1024):
    """Largest batch tile (multiple of 8, divides B) within a per-step VMEM budget."""
    if B % 8 != 0:
        return B  # single full-batch tile keeps the (Bb, out) output block legal
    per_row = 4 * (T * D + 6 * T * two_n)  # f32 input row + working intermediates
    bb = min(B, max(8, (budget_bytes // max(per_row, 1)) // 8 * 8))
    while B % bb != 0:
        bb -= 8
    return max(bb, 8)


def smarter_attention_net_forward(x, params, *, block_b=None):
    """x: (B, input_dim, T)   ->   y: (B, output_dim)."""
    B, D, T = x.shape
    xt = jnp.transpose(x, (0, 2, 1))          # (B, T, D); layout plumbing outside kernel
    N = params["W1"].shape[0]
    two_n = params["W4"].shape[0]
    out_dim = params["Wp2"].shape[0]

    if block_b is None:
        block_b = _pick_block_b(B, T, D, two_n)
    assert B % block_b == 0, (B, block_b)
    nb = B // block_b

    # Pack / pre-transpose parameters once (wrapper-side, not in the kernel).
    bn_t = jnp.stack([params["bn1"][0], params["bn1"][1],
                      params["bn2"][0], params["bn2"][1],
                      params["bn3"][0], params["bn3"][1]], axis=0)          # (6, T)
    bn_p = jnp.stack([params["bnp1"][0], params["bnp1"][1],
                      params["bnp2"][0], params["bnp2"][1]], axis=0)        # (4, 2N)

    w1_t = params["W1"].T
    w2_t = params["W2"].T
    w3_t = params["W3"].T
    w4_t = params["W4"].T
    wwh_t = params["Ww"][:, :two_n].T          # applied to states h
    wwc_t = params["Ww"][:, two_n:].T          # applied to context
    wp1_t = params["Wp1"].T
    wp2_t = params["Wp2"].T

    b1 = params["b1"][None, :]
    b2 = params["b2"][None, :]
    b3 = params["b3"][None, :]
    b4 = params["b4"][None, :]
    bw = params["bw"][None, :]
    wv = params["wv"]                          # (1, 2N)
    bv = params["bv"][None, :]                 # (1, 1)
    bp1 = params["bp1"][None, :]
    bp2 = params["bp2"][None, :]

    def resident(arr):
        # Full-array block, constant index map -> fetched once, stays in VMEM.
        return pl.BlockSpec(arr.shape, lambda b, _nd=arr.ndim: (0,) * _nd)

    in_specs = [
        pl.BlockSpec((block_b, T, D), lambda b: (b, 0, 0)),
        resident(bn_t),
        resident(w1_t), resident(b1),
        resident(w2_t), resident(b2),
        resident(w3_t), resident(b3),
        resident(w4_t), resident(b4),
        resident(wwh_t), resident(wwc_t), resident(bw),
        resident(wv), resident(bv),
        resident(bn_p),
        resident(wp1_t), resident(bp1),
        resident(wp2_t), resident(bp2),
    ]

    return pl.pallas_call(
        _smarter_attention_kernel,
        out_shape=jax.ShapeDtypeStruct((B, out_dim), xt.dtype),
        grid_spec=pltpu.PrefetchScalarGridSpec(
            num_scalar_prefetch=0,
            grid=(nb,),
            in_specs=in_specs,
            out_specs=pl.BlockSpec((block_b, out_dim), lambda b: (b, 0)),
        ),
        compiler_params=pltpu.CompilerParams(
            dimension_semantics=("parallel",),
            vmem_limit_bytes=48 * 1024 * 1024,
        ),
    )(xt, bn_t, w1_t, b1, w2_t, b2, w3_t, b3, w4_t, b4,
      wwh_t, wwc_t, bw, wv, bv, bn_p, wp1_t, bp1, wp2_t, bp2)


def reference_forward(x, p):
    """Pure-JAX reference mirroring the PyTorch forward (eval-mode BN)."""
    xt = jnp.transpose(x, (0, 2, 1)).astype(jnp.float32)
    mask = jnp.sum((xt != 0).astype(jnp.float32), axis=2) > 0
    mask_f = mask.astype(jnp.float32)

    def leaky(h, s):
        return jnp.where(h >= 0, h, s * h)

    def bn_time(h, bp):
        return h * bp[0][None, :, None] + bp[1][None, :, None]

    h = bn_time(xt, p["bn1"])
    h = leaky(h @ p["W1"].T + p["b1"], 0.1)
    h = bn_time(h, p["bn2"])
    h = leaky(h @ p["W2"].T + p["b2"], 0.1)
    h = bn_time(h, p["bn3"])
    h = leaky(h @ p["W3"].T + p["b3"], 0.1)
    h = leaky(h @ p["W4"].T + p["b4"], 0.1)

    hc = jnp.sum(mask_f[..., None] * h, axis=1)
    hc = hc / (jnp.sum(mask_f, axis=1, keepdims=True) + 1e-10)

    ctx = jnp.broadcast_to(hc[:, None, :], h.shape)
    cat = jnp.concatenate([h, ctx], axis=2)
    a = jnp.tanh(cat @ p["Ww"].T + p["bw"])
    scores = (a @ p["wv"].T + p["bv"])[..., 0]

    scores = jnp.where(mask, scores, -1000.0)
    w = jax.nn.softmax(scores, axis=1)
    fc = jnp.sum(h * w[..., None], axis=1)

    z = fc * p["bnp1"][0] + p["bnp1"][1]
    z = leaky(z @ p["Wp1"].T + p["bp1"], 0.01)
    z = z * p["bnp2"][0] + p["bnp2"][1]
    return z @ p["Wp2"].T + p["bp2"]


if __name__ == "__main__":
    # Small deterministic shapes implied by the module.
    B, T, D = 16, 8, 6           # batch, T_length, input_dim
    N = 16                       # num_neurons  -> backbone output width 2N = 32
    two_n = 2 * N
    out_dim = 4                  # output_dim

    key = jax.random.PRNGKey(0)
    keys = iter(jax.random.split(key, 32))

    def rnd(shape, scale=0.3):
        return scale * jax.random.normal(next(keys), shape, dtype=jnp.float32)

    def bn_affine(nf):
        # Eval-mode BatchNorm folded to (scale, shift).
        s = 1.0 + 0.1 * jax.random.normal(next(keys), (nf,), dtype=jnp.float32)
        h = 0.1 * jax.random.normal(next(keys), (nf,), dtype=jnp.float32)
        return s, h

    x = rnd((B, D, T), 1.0)
    # Zero out the last 2 time steps for half the batch to exercise the mask.
    x = x.at[: B // 2, :, T - 2:].set(0.0)

    params = {
        "bn1": bn_affine(T), "bn2": bn_affine(T), "bn3": bn_affine(T),
        "W1": rnd((N, D)), "b1": rnd((N,)),
        "W2": rnd((N, N)), "b2": rnd((N,)),
        "W3": rnd((two_n, N)), "b3": rnd((two_n,)),
        "W4": rnd((two_n, two_n)), "b4": rnd((two_n,)),
        "Ww": rnd((two_n, 2 * two_n)), "bw": rnd((two_n,)),
        "wv": rnd((1, two_n)), "bv": rnd((1,)),
        "bnp1": bn_affine(two_n), "bnp2": bn_affine(two_n),
        "Wp1": rnd((two_n, two_n)), "bp1": rnd((two_n,)),
        "Wp2": rnd((out_dim, two_n)), "bp2": rnd((out_dim,)),
    }

    out = smarter_attention_net_forward(x, params, block_b=8)   # grid=(2,)
    out = jax.block_until_ready(out)

    ref = reference_forward(x, params)
    assert out.shape == (B, out_dim), out.shape
    assert jnp.allclose(out, ref, atol=2e-4, rtol=2e-4), (
        "mismatch vs reference, max abs err = "
        f"{float(jnp.max(jnp.abs(out - ref)))}")

    print("KERNEL_OK")
</pallas_src>

<mosaic_0001>
module attributes {stable_mosaic.version = 11 : i64} {
  func.func @_smarter_attention_kernel(%arg0: i32, %arg1: memref<8x8x6xf32, #tpu.memory_space<vmem>>, %arg2: memref<6x8xf32, #tpu.memory_space<vmem>>, %arg3: memref<6x16xf32, #tpu.memory_space<vmem>>, %arg4: memref<1x16xf32, #tpu.memory_space<vmem>>, %arg5: memref<16x16xf32, #tpu.memory_space<vmem>>, %arg6: memref<1x16xf32, #tpu.memory_space<vmem>>, %arg7: memref<16x32xf32, #tpu.memory_space<vmem>>, %arg8: memref<1x32xf32, #tpu.memory_space<vmem>>, %arg9: memref<32x32xf32, #tpu.memory_space<vmem>>, %arg10: memref<1x32xf32, #tpu.memory_space<vmem>>, %arg11: memref<32x32xf32, #tpu.memory_space<vmem>>, %arg12: memref<32x32xf32, #tpu.memory_space<vmem>>, %arg13: memref<1x32xf32, #tpu.memory_space<vmem>>, %arg14: memref<1x32xf32, #tpu.memory_space<vmem>>, %arg15: memref<1x1xf32, #tpu.memory_space<vmem>>, %arg16: memref<4x32xf32, #tpu.memory_space<vmem>>, %arg17: memref<32x32xf32, #tpu.memory_space<vmem>>, %arg18: memref<1x32xf32, #tpu.memory_space<vmem>>, %arg19: memref<32x4xf32, #tpu.memory_space<vmem>>, %arg20: memref<1x4xf32, #tpu.memory_space<vmem>>, %arg21: memref<8x4xf32, #tpu.memory_space<vmem>>) attributes {dimension_semantics = [#tpu.dimension_semantics<parallel>], iteration_bounds = array<i64: 2>, scalar_prefetch = 0 : i64, scratch_operands = 0 : i64, tpu.core_type = #tpu.core_type<tc>, window_params = [{transform_indices = @transform_0, window_bounds = array<i64: 8, 8, 6>}, {pipeline_mode = #tpu.pipeline_mode<synchronous>, transform_indices = @transform_1, window_bounds = array<i64: 6, 8>}, {pipeline_mode = #tpu.pipeline_mode<synchronous>, transform_indices = @transform_2, window_bounds = array<i64: 6, 16>}, {pipeline_mode = #tpu.pipeline_mode<synchronous>, transform_indices = @transform_3, window_bounds = array<i64: 1, 16>}, {pipeline_mode = #tpu.pipeline_mode<synchronous>, transform_indices = @transform_4, window_bounds = array<i64: 16, 16>}, {pipeline_mode = #tpu.pipeline_mode<synchronous>, transform_indices = @transform_5, window_bounds = array<i64: 1, 16>}, {pipeline_mode = #tpu.pipeline_mode<synchronous>, transform_indices = @transform_6, window_bounds = array<i64: 16, 32>}, {pipeline_mode = #tpu.pipeline_mode<synchronous>, transform_indices = @transform_7, window_bounds = array<i64: 1, 32>}, {pipeline_mode = #tpu.pipeline_mode<synchronous>, transform_indices = @transform_8, window_bounds = array<i64: 32, 32>}, {pipeline_mode = #tpu.pipeline_mode<synchronous>, transform_indices = @transform_9, window_bounds = array<i64: 1, 32>}, {pipeline_mode = #tpu.pipeline_mode<synchronous>, transform_indices = @transform_10, window_bounds = array<i64: 32, 32>}, {pipeline_mode = #tpu.pipeline_mode<synchronous>, transform_indices = @transform_11, window_bounds = array<i64: 32, 32>}, {pipeline_mode = #tpu.pipeline_mode<synchronous>, transform_indices = @transform_12, window_bounds = array<i64: 1, 32>}, {pipeline_mode = #tpu.pipeline_mode<synchronous>, transform_indices = @transform_13, window_bounds = array<i64: 1, 32>}, {pipeline_mode = #tpu.pipeline_mode<synchronous>, transform_indices = @transform_14, window_bounds = array<i64: 1, 1>}, {pipeline_mode = #tpu.pipeline_mode<synchronous>, transform_indices = @transform_15, window_bounds = array<i64: 4, 32>}, {pipeline_mode = #tpu.pipeline_mode<synchronous>, transform_indices = @transform_16, window_bounds = array<i64: 32, 32>}, {pipeline_mode = #tpu.pipeline_mode<synchronous>, transform_indices = @transform_17, window_bounds = array<i64: 1, 32>}, {pipeline_mode = #tpu.pipeline_mode<synchronous>, transform_indices = @transform_18, window_bounds = array<i64: 32, 4>}, {pipeline_mode = #tpu.pipeline_mode<synchronous>, transform_indices = @transform_19, window_bounds = array<i64: 1, 4>}, {transform_indices = @transform_20, window_bounds = array<i64: 8, 4>}]} {
    %c0 = arith.constant 0 : index
    %c0_0 = arith.constant 0 : index
    %c0_1 = arith.constant 0 : index
    %0 = vector.load %arg1[%c0, %c0_0, %c0_1] : memref<8x8x6xf32, #tpu.memory_space<vmem>>, vector<8x8x6xf32>
    %cst = arith.constant 0.000000e+00 : f32
    %1 = vector.broadcast %cst : f32 to vector<8x8x6xf32>
    %2 = arith.cmpf one, %0, %1 : vector<8x8x6xf32>
    %3 = arith.extui %2 : vector<8x8x6xi1> to vector<8x8x6xi32>
    %4 = arith.sitofp %3 : vector<8x8x6xi32> to vector<8x8x6xf32>
    %cst_2 = arith.constant dense<0.000000e+00> : vector<8x8xf32>
    %5 = vector.multi_reduction <add>, %4, %cst_2 [2] : vector<8x8x6xf32> to vector<8x8xf32>
    %cst_3 = arith.constant 0.000000e+00 : f32
    %6 = vector.broadcast %cst_3 : f32 to vector<8x8xf32>
    %7 = arith.cmpf ogt, %5, %6 : vector<8x8xf32>
    %8 = arith.extui %7 : vector<8x8xi1> to vector<8x8xi32>
    %9 = arith.sitofp %8 : vector<8x8xi32> to vector<8x8xf32>
    %c0_4 = arith.constant 0 : index
    %c0_5 = arith.constant 0 : index
    %10 = vector.load %arg2[%c0_4, %c0_5] : memref<6x8xf32, #tpu.memory_space<vmem>>, vector<6x8xf32>
    %11 = vector.extract_strided_slice %10 {offsets = [0, 0], sizes = [1, 8], strides = [1, 1]} : vector<6x8xf32> to vector<1x8xf32>
    %12 = vector.shape_cast %11 : vector<1x8xf32> to vector<8xf32>
    %13 = vector.shape_cast %12 : vector<8xf32> to vector<1x8x1xf32>
    %14 = vector.broadcast %13 : vector<1x8x1xf32> to vector<8x8x6xf32>
    %15 = arith.mulf %0, %14 : vector<8x8x6xf32>
    %16 = vector.extract_strided_slice %10 {offsets = [1, 0], sizes = [1, 8], strides = [1, 1]} : vector<6x8xf32> to vector<1x8xf32>
    %17 = vector.shape_cast %16 : vector<1x8xf32> to vector<8xf32>
    %18 = vector.shape_cast %17 : vector<8xf32> to vector<1x8x1xf32>
    %19 = vector.broadcast %18 : vector<1x8x1xf32> to vector<8x8x6xf32>
    %20 = arith.addf %15, %19 : vector<8x8x6xf32>
    %c0_6 = arith.constant 0 : index
    %c0_7 = arith.constant 0 : index
    %21 = vector.load %arg3[%c0_6, %c0_7] : memref<6x16xf32, #tpu.memory_space<vmem>>, vector<6x16xf32>
    %c0_8 = arith.constant 0 : index
    %c0_9 = arith.constant 0 : index
    %22 = vector.load %arg4[%c0_8, %c0_9] : memref<1x16xf32, #tpu.memory_space<vmem>>, vector<1x16xf32>
    %23 = vector.shape_cast %20 : vector<8x8x6xf32> to vector<64x6xf32>
    %cst_10 = arith.constant dense<0.000000e+00> : vector<64x16xf32>
    %24 = tpu.matmul %23, %21, %cst_10 {dimension_numbers = #tpu.dot_dimension_numbers<[1], [0], [0], [1], [0, 0, 1, 1], [], []>} : vector<64x6xf32>, vector<6x16xf32>, vector<64x16xf32> -> vector<64x16xf32>
    %25 = vector.shape_cast %24 : vector<64x16xf32> to vector<8x8x16xf32>
    %26 = vector.shape_cast %22 : vector<1x16xf32> to vector<1x1x16xf32>
    %27 = vector.broadcast %26 : vector<1x1x16xf32> to vector<8x8x16xf32>
    %28 = arith.addf %25, %27 : vector<8x8x16xf32>
    %cst_11 = arith.constant 0.000000e+00 : f32
    %29 = vector.broadcast %cst_11 : f32 to vector<8x8x16xf32>
    %30 = arith.cmpf oge, %28, %29 : vector<8x8x16xf32>
    %cst_12 = arith.constant 1.000000e-01 : f32
    %31 = vector.broadcast %cst_12 : f32 to vector<8x8x16xf32>
    %32 = arith.mulf %28, %31 : vector<8x8x16xf32>
    %33 = arith.select %30, %28, %32 : vector<8x8x16xi1>, vector<8x8x16xf32>
    %34 = vector.extract_strided_slice %10 {offsets = [2, 0], sizes = [1, 8], strides = [1, 1]} : vector<6x8xf32> to vector<1x8xf32>
    %35 = vector.shape_cast %34 : vector<1x8xf32> to vector<8xf32>
    %36 = vector.shape_cast %35 : vector<8xf32> to vector<1x8x1xf32>
    %37 = vector.broadcast %36 : vector<1x8x1xf32> to vector<8x8x16xf32>
    %38 = arith.mulf %33, %37 : vector<8x8x16xf32>
    %39 = vector.extract_strided_slice %10 {offsets = [3, 0], sizes = [1, 8], strides = [1, 1]} : vector<6x8xf32> to vector<1x8xf32>
    %40 = vector.shape_cast %39 : vector<1x8xf32> to vector<8xf32>
    %41 = vector.shape_cast %40 : vector<8xf32> to vector<1x8x1xf32>
    %42 = vector.broadcast %41 : vector<1x8x1xf32> to vector<8x8x16xf32>
    %43 = arith.addf %38, %42 : vector<8x8x16xf32>
    %c0_13 = arith.constant 0 : index
    %c0_14 = arith.constant 0 : index
    %44 = vector.load %arg5[%c0_13, %c0_14] : memref<16x16xf32, #tpu.memory_space<vmem>>, vector<16x16xf32>
    %c0_15 = arith.constant 0 : index
    %c0_16 = arith.constant 0 : index
    %45 = vector.load %arg6[%c0_15, %c0_16] : memref<1x16xf32, #tpu.memory_space<vmem>>, vector<1x16xf32>
    %46 = vector.shape_cast %43 : vector<8x8x16xf32> to vector<64x16xf32>
    %cst_17 = arith.constant dense<0.000000e+00> : vector<64x16xf32>
    %47 = tpu.matmul %46, %44, %cst_17 {dimension_numbers = #tpu.dot_dimension_numbers<[1], [0], [0], [1], [0, 0, 1, 1], [], []>} : vector<64x16xf32>, vector<16x16xf32>, vector<64x16xf32> -> vector<64x16xf32>
    %48 = vector.shape_cast %47 : vector<64x16xf32> to vector<8x8x16xf32>
    %49 = vector.shape_cast %45 : vector<1x16xf32> to vector<1x1x16xf32>
    %50 = vector.broadcast %49 : vector<1x1x16xf32> to vector<8x8x16xf32>
    %51 = arith.addf %48, %50 : vector<8x8x16xf32>
    %cst_18 = arith.constant 0.000000e+00 : f32
    %52 = vector.broadcast %cst_18 : f32 to vector<8x8x16xf32>
    %53 = arith.cmpf oge, %51, %52 : vector<8x8x16xf32>
    %cst_19 = arith.constant 1.000000e-01 : f32
    %54 = vector.broadcast %cst_19 : f32 to vector<8x8x16xf32>
    %55 = arith.mulf %51, %54 : vector<8x8x16xf32>
    %56 = arith.select %53, %51, %55 : vector<8x8x16xi1>, vector<8x8x16xf32>
    %57 = vector.extract_strided_slice %10 {offsets = [4, 0], sizes = [1, 8], strides = [1, 1]} : vector<6x8xf32> to vector<1x8xf32>
    %58 = vector.shape_cast %57 : vector<1x8xf32> to vector<8xf32>
    %59 = vector.shape_cast %58 : vector<8xf32> to vector<1x8x1xf32>
    %60 = vector.broadcast %59 : vector<1x8x1xf32> to vector<8x8x16xf32>
    %61 = arith.mulf %56, %60 : vector<8x8x16xf32>
    %62 = vector.extract_strided_slice %10 {offsets = [5, 0], sizes = [1, 8], strides = [1, 1]} : vector<6x8xf32> to vector<1x8xf32>
    %63 = vector.shape_cast %62 : vector<1x8xf32> to vector<8xf32>
    %64 = vector.shape_cast %63 : vector<8xf32> to vector<1x8x1xf32>
    %65 = vector.broadcast %64 : vector<1x8x1xf32> to vector<8x8x16xf32>
    %66 = arith.addf %61, %65 : vector<8x8x16xf32>
    %c0_20 = arith.constant 0 : index
    %c0_21 = arith.constant 0 : index
    %67 = vector.load %arg7[%c0_20, %c0_21] : memref<16x32xf32, #tpu.memory_space<vmem>>, vector<16x32xf32>
    %c0_22 = arith.constant 0 : index
    %c0_23 = arith.constant 0 : index
    %68 = vector.load %arg8[%c0_22, %c0_23] : memref<1x32xf32, #tpu.memory_space<vmem>>, vector<1x32xf32>
    %69 = vector.shape_cast %66 : vector<8x8x16xf32> to vector<64x16xf32>
    %cst_24 = arith.constant dense<0.000000e+00> : vector<64x32xf32>
    %70 = tpu.matmul %69, %67, %cst_24 {dimension_numbers = #tpu.dot_dimension_numbers<[1], [0], [0], [1], [0, 0, 1, 1], [], []>} : vector<64x16xf32>, vector<16x32xf32>, vector<64x32xf32> -> vector<64x32xf32>
    %71 = vector.shape_cast %70 : vector<64x32xf32> to vector<8x8x32xf32>
    %72 = vector.shape_cast %68 : vector<1x32xf32> to vector<1x1x32xf32>
    %73 = vector.broadcast %72 : vector<1x1x32xf32> to vector<8x8x32xf32>
    %74 = arith.addf %71, %73 : vector<8x8x32xf32>
    %cst_25 = arith.constant 0.000000e+00 : f32
    %75 = vector.broadcast %cst_25 : f32 to vector<8x8x32xf32>
    %76 = arith.cmpf oge, %74, %75 : vector<8x8x32xf32>
    %cst_26 = arith.constant 1.000000e-01 : f32
    %77 = vector.broadcast %cst_26 : f32 to vector<8x8x32xf32>
    %78 = arith.mulf %74, %77 : vector<8x8x32xf32>
    %79 = arith.select %76, %74, %78 : vector<8x8x32xi1>, vector<8x8x32xf32>
    %c0_27 = arith.constant 0 : index
    %c0_28 = arith.constant 0 : index
    %80 = vector.load %arg9[%c0_27, %c0_28] : memref<32x32xf32, #tpu.memory_space<vmem>>, vector<32x32xf32>
    %c0_29 = arith.constant 0 : index
    %c0_30 = arith.constant 0 : index
    %81 = vector.load %arg10[%c0_29, %c0_30] : memref<1x32xf32, #tpu.memory_space<vmem>>, vector<1x32xf32>
    %82 = vector.shape_cast %79 : vector<8x8x32xf32> to vector<64x32xf32>
    %cst_31 = arith.constant dense<0.000000e+00> : vector<64x32xf32>
    %83 = tpu.matmul %82, %80, %cst_31 {dimension_numbers = #tpu.dot_dimension_numbers<[1], [0], [0], [1], [0, 0, 1, 1], [], []>} : vector<64x32xf32>, vector<32x32xf32>, vector<64x32xf32> -> vector<64x32xf32>
    %84 = vector.shape_cast %83 : vector<64x32xf32> to vector<8x8x32xf32>
    %85 = vector.shape_cast %81 : vector<1x32xf32> to vector<1x1x32xf32>
    %86 = vector.broadcast %85 : vector<1x1x32xf32> to vector<8x8x32xf32>
    %87 = arith.addf %84, %86 : vector<8x8x32xf32>
    %cst_32 = arith.constant 0.000000e+00 : f32
    %88 = vector.broadcast %cst_32 : f32 to vector<8x8x32xf32>
    %89 = arith.cmpf oge, %87, %88 : vector<8x8x32xf32>
    %cst_33 = arith.constant 1.000000e-01 : f32
    %90 = vector.broadcast %cst_33 : f32 to vector<8x8x32xf32>
    %91 = arith.mulf %87, %90 : vector<8x8x32xf32>
    %92 = arith.select %89, %87, %91 : vector<8x8x32xi1>, vector<8x8x32xf32>
    %cst_34 = arith.constant dense<0.000000e+00> : vector<8xf32>
    %93 = vector.multi_reduction <add>, %9, %cst_34 [1] : vector<8x8xf32> to vector<8xf32>
    %94 = vector.shape_cast %93 : vector<8xf32> to vector<8x1xf32>
    %cst_35 = arith.constant 1.000000e-10 : f32
    %95 = vector.broadcast %cst_35 : f32 to vector<8x1xf32>
    %96 = arith.addf %94, %95 : vector<8x1xf32>
    %97 = vector.shape_cast %9 : vector<8x8xf32> to vector<8x8x1xf32>
    %98 = vector.broadcast %97 : vector<8x8x1xf32> to vector<8x8x32xf32>
    %99 = arith.mulf %92, %98 : vector<8x8x32xf32>
    %cst_36 = arith.constant dense<0.000000e+00> : vector<8x32xf32>
    %100 = vector.multi_reduction <add>, %99, %cst_36 [1] : vector<8x8x32xf32> to vector<8x32xf32>
    %101 = vector.broadcast %96 : vector<8x1xf32> to vector<8x32xf32>
    %102 = arith.divf %100, %101 : vector<8x32xf32>
    %c0_37 = arith.constant 0 : index
    %c0_38 = arith.constant 0 : index
    %103 = vector.load %arg11[%c0_37, %c0_38] : memref<32x32xf32, #tpu.memory_space<vmem>>, vector<32x32xf32>
    %c0_39 = arith.constant 0 : index
    %c0_40 = arith.constant 0 : index
    %104 = vector.load %arg13[%c0_39, %c0_40] : memref<1x32xf32, #tpu.memory_space<vmem>>, vector<1x32xf32>
    %105 = vector.shape_cast %92 : vector<8x8x32xf32> to vector<64x32xf32>
    %cst_41 = arith.constant dense<0.000000e+00> : vector<64x32xf32>
    %106 = tpu.matmul %105, %103, %cst_41 {dimension_numbers = #tpu.dot_dimension_numbers<[1], [0], [0], [1], [0, 0, 1, 1], [], []>} : vector<64x32xf32>, vector<32x32xf32>, vector<64x32xf32> -> vector<64x32xf32>
    %107 = vector.shape_cast %106 : vector<64x32xf32> to vector<8x8x32xf32>
    %108 = vector.shape_cast %104 : vector<1x32xf32> to vector<1x1x32xf32>
    %109 = vector.broadcast %108 : vector<1x1x32xf32> to vector<8x8x32xf32>
    %110 = arith.addf %107, %109 : vector<8x8x32xf32>
    %c0_42 = arith.constant 0 : index
    %c0_43 = arith.constant 0 : index
    %111 = vector.load %arg12[%c0_42, %c0_43] : memref<32x32xf32, #tpu.memory_space<vmem>>, vector<32x32xf32>
    %cst_44 = arith.constant dense<0.000000e+00> : vector<8x32xf32>
    %112 = tpu.matmul %102, %111, %cst_44 {dimension_numbers = #tpu.dot_dimension_numbers<[1], [0], [0], [1], [0, 0, 1, 1], [], []>} : vector<8x32xf32>, vector<32x32xf32>, vector<8x32xf32> -> vector<8x32xf32>
    %113 = vector.shape_cast %112 : vector<8x32xf32> to vector<8x1x32xf32>
    %114 = vector.broadcast %113 : vector<8x1x32xf32> to vector<8x8x32xf32>
    %115 = arith.addf %110, %114 : vector<8x8x32xf32>
    %116 = math.tanh %115 : vector<8x8x32xf32>
    %c0_45 = arith.constant 0 : index
    %c0_46 = arith.constant 0 : index
    %117 = vector.load %arg14[%c0_45, %c0_46] : memref<1x32xf32, #tpu.memory_space<vmem>>, vector<1x32xf32>
    %118 = vector.shape_cast %117 : vector<1x32xf32> to vector<1x1x32xf32>
    %119 = vector.broadcast %118 : vector<1x1x32xf32> to vector<8x8x32xf32>
    %120 = arith.mulf %116, %119 : vector<8x8x32xf32>
    %cst_47 = arith.constant dense<0.000000e+00> : vector<8x8xf32>
    %121 = vector.multi_reduction <add>, %120, %cst_47 [2] : vector<8x8x32xf32> to vector<8x8xf32>
    %c0_48 = arith.constant 0 : index
    %c0_49 = arith.constant 0 : index
    %122 = vector.load %arg15[%c0_48, %c0_49] : memref<1x1xf32, #tpu.memory_space<vmem>>, vector<1x1xf32>
    %123 = vector.broadcast %122 : vector<1x1xf32> to vector<8x8xf32>
    %124 = arith.addf %121, %123 : vector<8x8xf32>
    %cst_50 = arith.constant -1.000000e+03 : f32
    %125 = vector.broadcast %cst_50 : f32 to vector<8x8xf32>
    %126 = arith.select %7, %124, %125 : vector<8x8xi1>, vector<8x8xf32>
    %cst_51 = arith.constant dense<0xFF800000> : vector<8xf32>
    %127 = vector.multi_reduction <maximumf>, %126, %cst_51 [1] : vector<8x8xf32> to vector<8xf32>
    %128 = vector.shape_cast %127 : vector<8xf32> to vector<8x1xf32>
    %129 = vector.broadcast %128 : vector<8x1xf32> to vector<8x8xf32>
    %130 = arith.subf %126, %129 : vector<8x8xf32>
    %131 = math.exp %130 : vector<8x8xf32>
    %cst_52 = arith.constant dense<0.000000e+00> : vector<8xf32>
    %132 = vector.multi_reduction <add>, %131, %cst_52 [1] : vector<8x8xf32> to vector<8xf32>
    %133 = vector.shape_cast %132 : vector<8xf32> to vector<8x1xf32>
    %134 = vector.broadcast %133 : vector<8x1xf32> to vector<8x8xf32>
    %135 = arith.divf %131, %134 : vector<8x8xf32>
    %136 = vector.shape_cast %135 : vector<8x8xf32> to vector<8x8x1xf32>
    %137 = vector.broadcast %136 : vector<8x8x1xf32> to vector<8x8x32xf32>
    %138 = arith.mulf %92, %137 : vector<8x8x32xf32>
    %cst_53 = arith.constant dense<0.000000e+00> : vector<8x32xf32>
    %139 = vector.multi_reduction <add>, %138, %cst_53 [1] : vector<8x8x32xf32> to vector<8x32xf32>
    %c0_54 = arith.constant 0 : index
    %c0_55 = arith.constant 0 : index
    %140 = vector.load %arg16[%c0_54, %c0_55] : memref<4x32xf32, #tpu.memory_space<vmem>>, vector<4x32xf32>
    %141 = vector.extract_strided_slice %140 {offsets = [0, 0], sizes = [1, 32], strides = [1, 1]} : vector<4x32xf32> to vector<1x32xf32>
    %142 = vector.shape_cast %141 : vector<1x32xf32> to vector<32xf32>
    %143 = vector.shape_cast %142 : vector<32xf32> to vector<1x32xf32>
    %144 = vector.broadcast %143 : vector<1x32xf32> to vector<8x32xf32>
    %145 = arith.mulf %139, %144 : vector<8x32xf32>
    %146 = vector.extract_strided_slice %140 {offsets = [1, 0], sizes = [1, 32], strides = [1, 1]} : vector<4x32xf32> to vector<1x32xf32>
    %147 = vector.shape_cast %146 : vector<1x32xf32> to vector<32xf32>
    %148 = vector.shape_cast %147 : vector<32xf32> to vector<1x32xf32>
    %149 = vector.broadcast %148 : vector<1x32xf32> to vector<8x32xf32>
    %150 = arith.addf %145, %149 : vector<8x32xf32>
    %c0_56 = arith.constant 0 : index
    %c0_57 = arith.constant 0 : index
    %151 = vector.load %arg17[%c0_56, %c0_57] : memref<32x32xf32, #tpu.memory_space<vmem>>, vector<32x32xf32>
    %cst_58 = arith.constant dense<0.000000e+00> : vector<8x32xf32>
    %152 = tpu.matmul %150, %151, %cst_58 {dimension_numbers = #tpu.dot_dimension_numbers<[1], [0], [0], [1], [0, 0, 1, 1], [], []>} : vector<8x32xf32>, vector<32x32xf32>, vector<8x32xf32> -> vector<8x32xf32>
    %c0_59 = arith.constant 0 : index
    %c0_60 = arith.constant 0 : index
    %153 = vector.load %arg18[%c0_59, %c0_60] : memref<1x32xf32, #tpu.memory_space<vmem>>, vector<1x32xf32>
    %154 = vector.broadcast %153 : vector<1x32xf32> to vector<8x32xf32>
    %155 = arith.addf %152, %154 : vector<8x32xf32>
    %cst_61 = arith.constant 0.000000e+00 : f32
    %156 = vector.broadcast %cst_61 : f32 to vector<8x32xf32>
    %157 = arith.cmpf oge, %155, %156 : vector<8x32xf32>
    %cst_62 = arith.constant 0.00999999977 : f32
    %158 = vector.broadcast %cst_62 : f32 to vector<8x32xf32>
    %159 = arith.mulf %155, %158 : vector<8x32xf32>
    %160 = arith.select %157, %155, %159 : vector<8x32xi1>, vector<8x32xf32>
    %161 = vector.extract_strided_slice %140 {offsets = [2, 0], sizes = [1, 32], strides = [1, 1]} : vector<4x32xf32> to vector<1x32xf32>
    %162 = vector.shape_cast %161 : vector<1x32xf32> to vector<32xf32>
    %163 = vector.shape_cast %162 : vector<32xf32> to vector<1x32xf32>
    %164 = vector.broadcast %163 : vector<1x32xf32> to vector<8x32xf32>
    %165 = arith.mulf %160, %164 : vector<8x32xf32>
    %166 = vector.extract_strided_slice %140 {offsets = [3, 0], sizes = [1, 32], strides = [1, 1]} : vector<4x32xf32> to vector<1x32xf32>
    %167 = vector.shape_cast %166 : vector<1x32xf32> to vector<32xf32>
    %168 = vector.shape_cast %167 : vector<32xf32> to vector<1x32xf32>
    %169 = vector.broadcast %168 : vector<1x32xf32> to vector<8x32xf32>
    %170 = arith.addf %165, %169 : vector<8x32xf32>
    %c0_63 = arith.constant 0 : index
    %c0_64 = arith.constant 0 : index
    %171 = vector.load %arg19[%c0_63, %c0_64] : memref<32x4xf32, #tpu.memory_space<vmem>>, vector<32x4xf32>
    %cst_65 = arith.constant dense<0.000000e+00> : vector<8x4xf32>
    %172 = tpu.matmul %170, %171, %cst_65 {dimension_numbers = #tpu.dot_dimension_numbers<[1], [0], [0], [1], [0, 0, 1, 1], [], []>} : vector<8x32xf32>, vector<32x4xf32>, vector<8x4xf32> -> vector<8x4xf32>
    %c0_66 = arith.constant 0 : index
    %c0_67 = arith.constant 0 : index
    %173 = vector.load %arg20[%c0_66, %c0_67] : memref<1x4xf32, #tpu.memory_space<vmem>>, vector<1x4xf32>
    %174 = vector.broadcast %173 : vector<1x4xf32> to vector<8x4xf32>
    %175 = arith.addf %172, %174 : vector<8x4xf32>
    %c0_68 = arith.constant 0 : index
    %c0_69 = arith.constant 0 : index
    %176 = vector.load %arg21[%c0_68, %c0_69] : memref<8x4xf32, #tpu.memory_space<vmem>>, vector<8x4xf32>
    tpu.vector_store %arg21[%c0_68, %c0_69], %175 {strides = array<i32>} : memref<8x4xf32, #tpu.memory_space<vmem>>, vector<8x4xf32>,
    return
  }
  func.func @transform_0(%arg0: i32) -> (i32, i32, i32) {
    %c0_i32 = arith.constant 0 : i32
    %c0_i32_0 = arith.constant 0 : i32
    %c0_i32_1 = arith.constant 0 : i32
    return %arg0, %c0_i32, %c0_i32_0 : i32, i32, i32
  }
  func.func @transform_1(%arg0: i32) -> (i32, i32) {
    %c0_i32 = arith.constant 0 : i32
    %c0_i32_0 = arith.constant 0 : i32
    %c0_i32_1 = arith.constant 0 : i32
    return %c0_i32, %c0_i32_0 : i32, i32
  }
  func.func @transform_2(%arg0: i32) -> (i32, i32) {
    %c0_i32 = arith.constant 0 : i32
    %c0_i32_0 = arith.constant 0 : i32
    %c0_i32_1 = arith.constant 0 : i32
    return %c0_i32, %c0_i32_0 : i32, i32
  }
  func.func @transform_3(%arg0: i32) -> (i32, i32) {
    %c0_i32 = arith.constant 0 : i32
    %c0_i32_0 = arith.constant 0 : i32
    %c0_i32_1 = arith.constant 0 : i32
    return %c0_i32, %c0_i32_0 : i32, i32
  }
  func.func @transform_4(%arg0: i32) -> (i32, i32) {
    %c0_i32 = arith.constant 0 : i32
    %c0_i32_0 = arith.constant 0 : i32
    %c0_i32_1 = arith.constant 0 : i32
    return %c0_i32, %c0_i32_0 : i32, i32
  }
  func.func @transform_5(%arg0: i32) -> (i32, i32) {
    %c0_i32 = arith.constant 0 : i32
    %c0_i32_0 = arith.constant 0 : i32
    %c0_i32_1 = arith.constant 0 : i32
    return %c0_i32, %c0_i32_0 : i32, i32
  }
  func.func @transform_6(%arg0: i32) -> (i32, i32) {
    %c0_i32 = arith.constant 0 : i32
    %c0_i32_0 = arith.constant 0 : i32
    %c0_i32_1 = arith.constant 0 : i32
    return %c0_i32, %c0_i32_0 : i32, i32
  }
  func.func @transform_7(%arg0: i32) -> (i32, i32) {
    %c0_i32 = arith.constant 0 : i32
    %c0_i32_0 = arith.constant 0 : i32
    %c0_i32_1 = arith.constant 0 : i32
    return %c0_i32, %c0_i32_0 : i32, i32
  }
  func.func @transform_8(%arg0: i32) -> (i32, i32) {
    %c0_i32 = arith.constant 0 : i32
    %c0_i32_0 = arith.constant 0 : i32
    %c0_i32_1 = arith.constant 0 : i32
    return %c0_i32, %c0_i32_0 : i32, i32
  }
  func.func @transform_9(%arg0: i32) -> (i32, i32) {
    %c0_i32 = arith.constant 0 : i32
    %c0_i32_0 = arith.constant 0 : i32
    %c0_i32_1 = arith.constant 0 : i32
    return %c0_i32, %c0_i32_0 : i32, i32
  }
  func.func @transform_10(%arg0: i32) -> (i32, i32) {
    %c0_i32 = arith.constant 0 : i32
    %c0_i32_0 = arith.constant 0 : i32
    %c0_i32_1 = arith.constant 0 : i32
    return %c0_i32, %c0_i32_0 : i32, i32
  }
  func.func @transform_11(%arg0: i32) -> (i32, i32) {
    %c0_i32 = arith.constant 0 : i32
    %c0_i32_0 = arith.constant 0 : i32
    %c0_i32_1 = arith.constant 0 : i32
    return %c0_i32, %c0_i32_0 : i32, i32
  }
  func.func @transform_12(%arg0: i32) -> (i32, i32) {
    %c0_i32 = arith.constant 0 : i32
    %c0_i32_0 = arith.constant 0 : i32
    %c0_i32_1 = arith.constant 0 : i32
    return %c0_i32, %c0_i32_0 : i32, i32
  }
  func.func @transform_13(%arg0: i32) -> (i32, i32) {
    %c0_i32 = arith.constant 0 : i32
    %c0_i32_0 = arith.constant 0 : i32
    %c0_i32_1 = arith.constant 0 : i32
    return %c0_i32, %c0_i32_0 : i32, i32
  }
  func.func @transform_14(%arg0: i32) -> (i32, i32) {
    %c0_i32 = arith.constant 0 : i32
    %c0_i32_0 = arith.constant 0 : i32
    %c0_i32_1 = arith.constant 0 : i32
    return %c0_i32, %c0_i32_0 : i32, i32
  }
  func.func @transform_15(%arg0: i32) -> (i32, i32) {
    %c0_i32 = arith.constant 0 : i32
    %c0_i32_0 = arith.constant 0 : i32
    %c0_i32_1 = arith.constant 0 : i32
    return %c0_i32, %c0_i32_0 : i32, i32
  }
  func.func @transform_16(%arg0: i32) -> (i32, i32) {
    %c0_i32 = arith.constant 0 : i32
    %c0_i32_0 = arith.constant 0 : i32
    %c0_i32_1 = arith.constant 0 : i32
    return %c0_i32, %c0_i32_0 : i32, i32
  }
  func.func @transform_17(%arg0: i32) -> (i32, i32) {
    %c0_i32 = arith.constant 0 : i32
    %c0_i32_0 = arith.constant 0 : i32
    %c0_i32_1 = arith.constant 0 : i32
    return %c0_i32, %c0_i32_0 : i32, i32
  }
  func.func @transform_18(%arg0: i32) -> (i32, i32) {
    %c0_i32 = arith.constant 0 : i32
    %c0_i32_0 = arith.constant 0 : i32
    %c0_i32_1 = arith.constant 0 : i32
    return %c0_i32, %c0_i32_0 : i32, i32
  }
  func.func @transform_19(%arg0: i32) -> (i32, i32) {
    %c0_i32 = arith.constant 0 : i32
    %c0_i32_0 = arith.constant 0 : i32
    %c0_i32_1 = arith.constant 0 : i32
    return %c0_i32, %c0_i32_0 : i32, i32
  }
  func.func @transform_20(%arg0: i32) -> (i32, i32) {
    %c0_i32 = arith.constant 0 : i32
    %c0_i32_0 = arith.constant 0 : i32
    return %arg0, %c0_i32 : i32, i32
  }
}

</mosaic_0001>

<bundles_post_ra>
// kernel: tpu_custom_call.1
= control target key start
LH: loop header
LB: loop body
LE: loop exit
PB: predicated region body
PF: predicated region fallthrough
CT: control target
= control target key end

     0   :  { %s3210_s23 = smov 0   ;;  %s3778_s0 = inlined_call_operand.vmem [shape: f32[16,8,6], index: 0, kind: input, shape index: {}]   ;;  %s3779_s1 = inlined_call_operand.vmem [shape: f32[6,8], index: 1, kind: input, shape index: {}]   ;;  %s3780_s2 = inlined_call_operand.vmem [shape: f32[6,16], index: 2, kind: input, shape index: {}]   ;;  %s3781_s3 = inlined_call_operand.vmem [shape: f32[1,16], index: 3, kind: input, shape index: {}]   ;;  %s3782_s4 = inlined_call_operand.vmem [shape: f32[16,16], index: 4, kind: input, shape index: {}]   ;;  %s3783_s5 = inlined_call_operand.vmem [shape: f32[1,16], index: 5, kind: input, shape index: {}]   ;;  %s3784_s6 = inlined_call_operand.vmem [shape: f32[16,32], index: 6, kind: input, shape index: {}]   ;;  %s3785_s7 = inlined_call_operand.vmem [shape: f32[1,32], index: 7, kind: input, shape index: {}]   ;;  %s3786_s8 = inlined_call_operand.vmem [shape: f32[32,32], index: 8, kind: input, shape index: {}]   ;;  %s3787_s9 = inlined_call_operand.vmem [shape: f32[1,32], index: 9, kind: input, shape index: {}]   ;;  %s3788_s10 = inlined_call_operand.vmem [shape: f32[32,32], index: 10, kind: input, shape index: {}]   ;;  %s3789_s11 = inlined_call_operand.vmem [shape: f32[32,32], index: 11, kind: input, shape index: {}]   ;;  %s3790_s12 = inlined_call_operand.vmem [shape: f32[1,32], index: 12, kind: input, shape index: {}]   ;;  %s3791_s13 = inlined_call_operand.vmem [shape: f32[1,32], index: 13, kind: input, shape index: {}]   ;;  %s3792_s14 = inlined_call_operand.<no memory space> [shape: f32[1,1], index: 14, kind: input, shape index: {}]   ;;  %s3793_s15 = inlined_call_operand.vmem [shape: f32[4,32], index: 15, kind: input, shape index: {}]   ;;  %s3794_s16 = inlined_call_operand.vmem [shape: f32[32,32], index: 16, kind: input, shape index: {}]   ;;  %s3795_s17 = inlined_call_operand.vmem [shape: f32[1,32], index: 17, kind: input, shape index: {}]   ;;  %s3796_s18 = inlined_call_operand.vmem [shape: f32[32,4], index: 18, kind: input, shape index: {}]   ;;  %s3797_s19 = inlined_call_operand.vmem [shape: f32[1,4], index: 19, kind: input, shape index: {}]   ;;  %s3798_s20 = inlined_call_operand.vmem [shape: f32[16,4], index: 20, kind: output, shape index: {}]  }
   0x1   :  { %3806 = sst [smem:[#allocation3_spill]] %s3778_s0  ;;  %v25_v0 = vstv %s3792_s14 }
   0x2   :  { %3807 = sst [smem:[#allocation4_spill]] %s3779_s1  ;;  %26 = vst [vmem:[#allocation2] sm:$0x1] %v25_v0 }
   0x3   :  { %3808 = sst [smem:[#allocation5_spill]] %s3780_s2 }
   0x4   :  { %3809 = sst [smem:[#allocation6_spill]] %s3781_s3 }
   0x5   :  { %3810 = sst [smem:[#allocation7_spill]] %s3782_s4 }
   0x6 LB: > { %s3216_s24 = sadd.s32 4294967295, %s3095_s23   ;;  %p2704_p0 = scmp.ge.s32.totalorder %s3095_s23, 1  ;;  %s3095_s23 = sphi %s3210_s23, %s32_s23  }
   0x7   : > { %p565_p1 = scmp.lt.s32.totalorder %s3095_s23, 3 }
   0x9   : > { %p566_p2 = pnand %p2704_p0, %p565_p1 }
   0xa   : > { %v714_v1 = vlaneseq (!%p566_p2)  ;;  %s3811_s25 = sld [smem:[#allocation5_spill]] (!%p566_p2)  ;;  %vm770_vm0 = vcmask (!%p566_p2), 1045504   ;;  %s3812_s27 = sld [smem:[#allocation4_spill]] (!%p566_p2)  ;;  %vm664_vm1 = vcmask (!%p566_p2), 48128   ;;  %v1148_v44 = vld [vmem:[%s3784_s6] sm:$0xff] (!%p566_p2)  ;;  %v1149_v45 = vld [vmem:[%s3784_s6 + $0x8] sm:$0xff] (!%p566_p2) }
   0xb   : > { %569 = sbr.rel (%p566_p2) target bundleno = 2559 (0x9ff), region = 100  ;;  %s2705_s28 = sshll.u32 (!%p566_p2), %s3216_s24, 3  ;;  %v2970_v46 = vpack.c.bf16 (!%p566_p2), %v1149_v45, %v1148_v44  ;;  %vm950_vm4 = vcmask (!%p566_p2), 130048  }
   0xc   : > { %v3224_v3 = vshrl.u32 (!%p566_p2), %v714_v1, 7  ;;  %p623_p3 = scmp.lt.s32.totalorder (!%p566_p2), %s2705_s28, 15  ;;  %s3813_s0 = sld [smem:[#allocation3_spill]] (!%p566_p2) }
   0xd   : > { %s3814_s2 = sld [smem:[#allocation7_spill]] (!%p566_p2)  ;;  %s3815_s30 = sld [smem:[#allocation6_spill]] (!%p566_p2) }
   0xe   : > { %v3232_v5 = vsub.s32 (!%p566_p2), 0, %v3224_v3  ;;  %v3235_v6 = vsub.s32 (!%p566_p2), 1, %v3224_v3  ;;  %v3242_v9 = vsub.s32 (!%p566_p2), 2, %v3224_v3  ;;  %v3245_v10 = vsub.s32 (!%p566_p2), 3, %v3224_v3  ;;  %p628_p4 = scmp.lt.s32.totalorder (!%p566_p2), %s3216_s24, 1 }
   0xf   : > { %v3294_v42 = vsub.s32 (!%p566_p2), 4, %v3224_v3  ;;  %v3297_v43 = vsub.s32 (!%p566_p2), 5, %v3224_v3 }
  0x10   : > { %v744_v2 = vld [vmem:[%s3811_s25] sm:$0x3f] (!%p566_p2) }
  0x11   : > { %2847 = vmatprep.subr.msk.mxu0 (!%p566_p2), %vm770_vm0, %v744_v2  ;;  %3008 = vmatprep.subr.msk.mxu1 (!%p566_p2), %vm770_vm0, %v744_v2  ;;  %v3229_v4 = vld [vmem:[%s3812_s27] sm:$0x3f] (!%p566_p2) }
  0x12   : > { %2848 = vmatpush3.msk.msra.mxu0 %vm770_vm0, %v744_v2  ;;  %3009 = vmatpush3.msk.msra.mxu1 %vm770_vm0, %v744_v2  ;;  %v717_v7 = vrot.slane %v3229_v4, %v3232_v5  ;;  %v732_v8 = vrot.slane %v3229_v4, %v3235_v6  ;;  %v920_v11 = vrot.slane %v3229_v4, %v3242_v9  ;;  %s3824_s28 = smov (!%p623_p3, %s2705_s28), 15  ;;  %s3826_s24 = smov (!%p628_p4, %s3216_s24), 1 }
  0x13   : > { %v935_v12 = vrot.slane %v3229_v4, %v3245_v10  ;;  %s2706_s4 = sshll.u32 %s3824_s28, 3  ;;  %v947_v39 = vld [vmem:[%s3814_s2] sm:$0xff]  ;;  %v948_v40 = vld [vmem:[%s3814_s2 + $0x8] sm:$0xff]  ;;  %v1121_v47 = vrot.slane %v3229_v4, %v3294_v42  ;;  %v1136_v48 = vrot.slane %v3229_v4, %v3297_v43  ;;  %2971 = vmatprep.subr.bf16.mxu0 %v2970_v46  ;;  %s2707_s1 = sshll.u32 %s3826_s24, 3 }
  0x14   : > { %719 = vbcast.lane.b32.xlu0 %v717_v7, 256  ;;  %922 = vbcast.lane.b32.xlu1 %v920_v11, 256  ;;  %s626_s21 = scalar_lea.vmem %s3813_s0, %s2706_s4  ;;  %v2966_v41 = vpack.c.bf16 %v948_v40, %v947_v39  ;;  %v2733_v49 = vld [vmem:[%s3815_s30] ss:$0 sm:$0xff]  ;;  %s631_s26 = scalar_lea.vmem %s3798_s20, %s2707_s1 }
  0x15   : > { %v3255_v13 = vld [vmem:[%s626_s21] sm:$0xff]  ;;  %v3257_v15 = vld [vmem:[%s626_s21 + $0x30] sm:$0xff]  ;;  %v3259_v16 = vld [vmem:[%s626_s21 + $0x8] sm:$0xff] }
  0x16   : > { %v3261_v17 = vld [vmem:[%s626_s21 + $0x38] sm:$0xff]  ;;  %v3263_v18 = vld [vmem:[%s626_s21 + $0x10] sm:$0xff]  ;;  %v3272_v30 = vld [vmem:[%s626_s21 + $0x20] sm:$0xff]  ;;  %2967 = vmatprep.subr.bf16.mxu1 %v2966_v41  ;;  %vm640_vm11 = vcmp.ne.f32.partialorder %v3255_v13, 0.0  ;;  %vm641_vm13 = vcmp.ne.f32.partialorder %v3259_v16, 0.0  ;;  %vm646_vm0 = vcmp.ne.f32.partialorder %v3257_v15, 0.0 }
  0x17   : > { %v3270_v29 = vld [vmem:[%s626_s21 + $0x18] sm:$0xff]  ;;  %v3281_v34 = vld [vmem:[%s626_s21 + $0x28] sm:$0xff]  ;;  %vm642_vm12 = vcmp.ne.f32.partialorder %v3263_v18, 0.0  ;;  %vm644_vm15 = vcmp.ne.f32.partialorder %v3272_v30, 0.0 }
  0x18   : > { %734 = vbcast.lane.b32.xlu0 %v732_v8, 256  ;;  %937 = vbcast.lane.b32.xlu1 %v935_v12, 256  ;;  %vm643_vm14 = vcmp.ne.f32.partialorder %v3270_v29, 0.0 }
  0x1c   : > { %1123 = vbcast.lane.b32.xlu0 %v1121_v47, 256  ;;  %1138 = vbcast.lane.b32.xlu1 %v1136_v48, 256 }
  0x86   : > { %v720_v14 = vpop.permute.xlu0 %719  ;;  %v923_v50 = vpop.permute.xlu1 %922 }
  0x87   : > { %v721_v19 = vmul.f32 %v720_v14, %v3255_v13  ;;  %v727_v20 = vmul.f32 %v720_v14, %v3257_v15  ;;  %v722_v21 = vmul.f32 %v720_v14, %v3259_v16  ;;  %v728_v22 = vmul.f32 %v720_v14, %v3261_v17  ;;  %v1318_v13 = vld [vmem:[%s3786_s8] sm:$0xff]  ;;  %v1319_v16 = vld [vmem:[%s3786_s8 + $0x8] sm:$0xff] }
  0x88   : > { %v723_v24 = vmul.f32 %v720_v14, %v3263_v18  ;;  %v724_v32 = vmul.f32 %v720_v14, %v3270_v29  ;;  %v725_v33 = vmul.f32 %v720_v14, %v3272_v30  ;;  %v726_v37 = vmul.f32 %v720_v14, %v3281_v34  ;;  %v1320_v18 = vld [vmem:[%s3786_s8 + $0x10] sm:$0xff]  ;;  %v1321_v29 = vld [vmem:[%s3786_s8 + $0x18] sm:$0xff] }
  0x8a   : > { %v735_v23 = vpop.permute.xlu0 %734  ;;  %v938_v2 = vpop.permute.xlu1 %937 }
  0x8b   : > { %v736_v25 = vadd.f32 %v735_v23, %v721_v19  ;;  %v742_v26 = vadd.f32 %v735_v23, %v727_v20  ;;  %v737_v27 = vadd.f32 %v735_v23, %v722_v21  ;;  %v743_v28 = vadd.f32 %v735_v23, %v728_v22 }
  0x8c   : > { %v738_v31 = vadd.f32 %v735_v23, %v723_v24  ;;  %v739_v35 = vadd.f32 %v735_v23, %v724_v32  ;;  %v740_v36 = vadd.f32 %v735_v23, %v725_v33  ;;  %v741_v38 = vadd.f32 %v735_v23, %v726_v37 }
  0x8d   : > { %2849 = vmatprep.mubr.msk.f32.mxu0 %vm664_vm1, %v736_v25  ;;  %2858 = vmatprep.mubr.msk.f32.mxu1 %vm664_vm1, %v742_v26 }
  0x8e   : > { %2850 = vmatmul.mubr.msk.f32.vlgmr.msra.gmra.mrb[0].mxu0 %vm664_vm1, %v737_v27  ;;  %2859 = vmatmul.mubr.msk.f32.vlgmr.msra.gmra.mrb[0].mxu1 %vm664_vm1, %v743_v28 }
  0x8f   : > { %2852 = vmatprep.mubr.msk.f32.mxu0 %vm664_vm1, %v738_v31  ;;  %2969 = vmatpush3.bf16.msra.mxu1 %v2966_v41 }
  0x90   : > { %2973 = vmatpush3.bf16.msra.mxu0 %v2970_v46 }
  0x92   : > { %2853 = vmatmul.mubr.msk.f32.gmra.mrb[2].mxu0 %vm664_vm1, %v739_v35 }
  0x93   : > { %2855 = vmatprep.mubr.msk.f32.mxu0 %vm664_vm1, %v740_v36 }
  0x96   : > { %2856 = vmatmul.mubr.msk.f32.gmra.mrb[4].mxu0 %vm664_vm1, %v741_v38 }
 0x161   : > { %v2851_v51 = vpop.f32.mrb[0].mxu0  ;;  %v2860_v52 = vpop.f32.mrb[0].mxu1 }
 0x162   : > { %v886_v53 = vadd.f32 %v2851_v51, %v2733_v49  ;;  %v840_v54 = vpop.f32.mrb[1].mxu0  ;;  %v870_v55 = vpop.f32.mrb[1].mxu1  ;;  %v892_v11 = vadd.f32 %v2860_v52, %v2733_v49 }
 0x163   : > { %v885_v56 = vadd.f32 %v2733_v49, %v840_v54  ;;  %v891_v59 = vadd.f32 %v2733_v49, %v870_v55 }
 0x164   : > { %vm894_vm2 = vcmp.ge.f32.partialorder %v886_v53, 0.0  ;;  %v902_v57 = vmul.f32 0.1, %v886_v53  ;;  %v908_v32 = vmul.f32 0.1, %v892_v11  ;;  %vm900_vm10 = vcmp.ge.f32.partialorder %v892_v11, 0.0 }
 0x165   : > { %vm893_vm3 = vcmp.ge.f32.partialorder %v885_v56, 0.0  ;;  %v901_v58 = vmul.f32 0.1, %v885_v56  ;;  %v2854_v61 = vpop.f32.mrb[2].mxu0  ;;  %v907_v12 = vmul.f32 0.1, %v891_v59 }
 0x166   : > { %v910_v60 = vsel %vm894_vm2, %v886_v53, %v902_v57  ;;  %v888_v63 = vadd.f32 %v2854_v61, %v2733_v49  ;;  %v850_v0 = vpop.f32.mrb[3].mxu0  ;;  %vm899_vm7 = vcmp.ge.f32.partialorder %v891_v59, 0.0  ;;  %v916_v45 = vsel %vm900_vm10, %v892_v11, %v908_v32 }
 0x167   : > { %v909_v62 = vsel %vm893_vm3, %v885_v56, %v901_v58  ;;  %v925_v4 = vmul.f32 %v923_v50, %v910_v60  ;;  %v887_v7 = vadd.f32 %v2733_v49, %v850_v0  ;;  %v915_v36 = vsel %vm899_vm7, %v891_v59, %v907_v12 }
 0x168   : > { %v924_v8 = vmul.f32 %v923_v50, %v909_v62  ;;  %vm896_vm5 = vcmp.ge.f32.partialorder %v888_v63, 0.0  ;;  %v904_v14 = vmul.f32 0.1, %v888_v63  ;;  %v930_v46 = vmul.f32 %v923_v50, %v915_v36 }
 0x169   : > { %v2857_v19 = vpop.f32.mrb[4].mxu0  ;;  %vm895_vm6 = vcmp.ge.f32.partialorder %v887_v7, 0.0  ;;  %v903_v20 = vmul.f32 0.1, %v887_v7  ;;  %v940_v26 = vadd.f32 %v938_v2, %v925_v4  ;;  %v3097_v53 = vmov 0.0  }
 0x16a   : > { %v890_v21 = vadd.f32 %v2857_v19, %v2733_v49  ;;  %v860_v22 = vpop.f32.mrb[5].mxu0  ;;  %v939_v23 = vadd.f32 %v938_v2, %v924_v8  ;;  %v912_v24 = vsel %vm896_vm5, %v888_v63, %v904_v14  ;;  %v945_v51 = vadd.f32 %v938_v2, %v930_v46  ;;  %v2742_v8 = vld [vmem:[%s3783_s5] ss:$0 sm:$0xff] }
 0x16b   : > { %v889_v25 = vadd.f32 %v2733_v49, %v860_v22  ;;  %v927_v27 = vmul.f32 %v923_v50, %v912_v24  ;;  %v911_v28 = vsel %vm895_vm6, %v887_v7, %v903_v20  ;;  %v931_v49 = vmul.f32 %v923_v50, %v916_v45  ;;  %v1124_v20 = vpop.permute.xlu0 %1123 }
 0x16c   : > { %vm898_vm8 = vcmp.ge.f32.partialorder %v890_v21, 0.0  ;;  %v906_v31 = vmul.f32 0.1, %v890_v21  ;;  %2865 = vmatprep.mubr.msk.f32.mxu1 %vm950_vm4, %v939_v23  ;;  %v926_v33 = vmul.f32 %v923_v50, %v911_v28  ;;  %v2708_v54 = vsel %vm640_vm11, 1.0, %v3097_v53 }
 0x16d   : > { %vm897_vm9 = vcmp.ge.f32.partialorder %v889_v25, 0.0  ;;  %v905_v35 = vmul.f32 0.1, %v889_v25  ;;  %2866 = vmatmul.mubr.msk.f32.vlgmr.msra.gmra.mrb[2].mxu1 %vm950_vm4, %v940_v26  ;;  %v942_v44 = vadd.f32 %v938_v2, %v927_v27  ;;  %v946_v52 = vadd.f32 %v938_v2, %v931_v49  ;;  %v1139_v27 = vpop.permute.xlu1 %1138 }
 0x16e   : > { %v914_v37 = vsel %vm898_vm8, %v890_v21, %v906_v31  ;;  %v941_v39 = vadd.f32 %v938_v2, %v926_v33  ;;  %v2710_v55 = vsel %vm642_vm12, 1.0, %v3097_v53  ;;  %v665_v56 = vsel %vm664_vm1, %v2708_v54, 0.0 }
 0x16f   : > { %v913_v38 = vsel %vm897_vm9, %v889_v25, %v905_v35  ;;  %v929_v40 = vmul.f32 %v923_v50, %v914_v37  ;;  %666 = vadd.xlane.f32.xlu0 %v665_v56  ;;  %v671_v58 = vsel %vm664_vm1, %v2710_v55, 0.0  ;;  %v2712_v59 = vsel %vm644_vm15, 1.0, %v3097_v53 }
 0x170   : > { %v928_v41 = vmul.f32 %v923_v50, %v913_v38  ;;  %2868 = vmatprep.mubr.msk.f32.mxu1 %vm950_vm4, %v941_v39  ;;  %v2709_v50 = vsel %vm641_vm13, 1.0, %v3097_v53  ;;  %v2711_v30 = vsel %vm643_vm14, 1.0, %v3097_v53  ;;  %v677_v15 = vsel %vm664_vm1, %v2712_v59, 0.0 }
 0x171   : > { %2869 = vmatmul.mubr.msk.f32.gmra.mrb[4].mxu1 %vm950_vm4, %v942_v44  ;;  %v944_v48 = vadd.f32 %v938_v2, %v929_v40  ;;  %v668_v57 = vsel %vm664_vm1, %v2709_v50, 0.0  ;;  %v2714_v60 = vsel %vm646_vm0, 1.0, %v3097_v53  ;;  %vm645_vm2 = vcmp.ne.f32.partialorder %v3281_v34, 0.0 }
 0x172   : > { %v943_v47 = vadd.f32 %v938_v2, %v928_v41  ;;  %669 = vadd.xlane.f32.xlu1 %v668_v57  ;;  %v2974_v61 = vpack.c.bf16 %v1319_v16, %v1318_v13  ;;  %v2978_v62 = vpack.c.bf16 %v1321_v29, %v1320_v18  ;;  %v674_v63 = vsel %vm664_vm1, %v2711_v30, 0.0 }
 0x173   : > { %672 = vadd.xlane.f32.xlu0 %v671_v58  ;;  %v683_v0 = vsel %vm664_vm1, %v2714_v60, 0.0  ;;  %v2713_v2 = vsel %vm645_vm2, 1.0, %v3097_v53  ;;  %vm647_vm3 = vcmp.ne.f32.partialorder %v3261_v17, 0.0  ;;  %vm1535_vm0 = vcmask 1042434  }
 0x174   : > { %2871 = vmatprep.mubr.msk.f32.mxu1 %vm950_vm4, %v943_v47  ;;  %2975 = vmatprep.subr.bf16.mxu1 %v2974_v61  ;;  %v680_v4 = vsel %vm664_vm1, %v2713_v2, 0.0  ;;  %v2715_v34 = vsel %vm647_vm3, 1.0, %v3097_v53  ;;  %v1500_v2 = vand.u32 127, %v714_v1 }
 0x175   : > { %2872 = vmatmul.mubr.msk.f32.gmra.mrb[6].mxu1 %vm950_vm4, %v944_v48  ;;  %v686_v7 = vsel %vm664_vm1, %v2715_v34, 0.0 }
 0x176   : > { %2874 = vmatprep.mubr.msk.f32.mxu1 %vm950_vm4, %v945_v51  ;;  %678 = vadd.xlane.f32.xlu1 %v677_v15 }
 0x177   : > { %2977 = vmatpush3.bf16.msra.mxu1 %v2974_v61  ;;  %675 = vadd.xlane.f32.xlu0 %v674_v63 }
 0x178   : > { %2979 = vmatprep.subr.bf16.mxu1 %v2978_v62 }
 0x179   : > { %2875 = vmatmul.mubr.msk.f32.gmra.mrb[8].mxu1 %vm950_vm4, %v946_v52 }
 0x17a   : > { %684 = vadd.xlane.f32.xlu1 %v683_v0 }
 0x17b   : > { %2981 = vmatpush3.bf16.msra.mxu1 %v2978_v62  ;;  %681 = vadd.xlane.f32.xlu0 %v680_v4  ;;  %v3369_v4 = vsub.s32 %v1500_v2, %v3224_v3 }
 0x17f   : > { %687 = vadd.xlane.f32.xlu0 %v686_v7 }
 0x1fc   : > { %v3371_v34 = vpop.xlane.xlu0 %666 }
 0x1fd   : > { %vm689_vm12 = vcmp.gt.f32.partialorder %v3371_v34, 0.0 }
 0x1ff   : > { %v3373_v7 = vpop.xlane.xlu1 %669 }
 0x200   : > { %vm690_vm13 = vcmp.gt.f32.partialorder %v3373_v7, 0.0 }
 0x201   : > { %v3385_v1 = vsel %vm690_vm13, 1.0, %v3097_v53 }
 0x240   : > { %v2867_v11 = vpop.f32.mrb[2].mxu1 }
 0x241   : > { %v1087_v12 = vadd.f32 %v2867_v11, %v2742_v8  ;;  %v1041_v14 = vpop.f32.mrb[3].mxu1 }
 0x242   : > { %v1086_v17 = vadd.f32 %v2742_v8, %v1041_v14  ;;  %v3391_v14 = vpop.xlane.xlu0 %672 }
 0x243   : > { %vm1095_vm5 = vcmp.ge.f32.partialorder %v1087_v12, 0.0  ;;  %v1103_v19 = vmul.f32 0.1, %v1087_v12  ;;  %vm691_vm14 = vcmp.gt.f32.partialorder %v3391_v14, 0.0 }
 0x244   : > { %vm1094_vm6 = vcmp.ge.f32.partialorder %v1086_v17, 0.0  ;;  %v1102_v21 = vmul.f32 0.1, %v1086_v17  ;;  %v2870_v23 = vpop.f32.mrb[4].mxu1 }
 0x245   : > { %v1111_v22 = vsel %vm1095_vm5, %v1087_v12, %v1103_v19  ;;  %v1089_v25 = vadd.f32 %v2870_v23, %v2742_v8  ;;  %v1051_v26 = vpop.f32.mrb[5].mxu1  ;;  %v1508_v12 = vrot.slane %v3385_v1, %v3369_v4  ;;  %v3400_v19 = vsel %vm691_vm14, 1.0, %v3097_v53 }
 0x246   : > { %v1110_v24 = vsel %vm1094_vm6, %v1086_v17, %v1102_v21  ;;  %v1126_v28 = vmul.f32 %v1124_v20, %v1111_v22  ;;  %v1088_v31 = vadd.f32 %v2742_v8, %v1051_v26  ;;  %v3393_v17 = vpop.xlane.xlu1 %678  ;;  %v3410_v23 = vpop.xlane.xlu0 %675  ;;  %vm1537_vm5 = vcmask 1043459  }
 0x247   : > { %v1125_v32 = vmul.f32 %v1124_v20, %v1110_v24  ;;  %vm1097_vm1 = vcmp.ge.f32.partialorder %v1089_v25, 0.0  ;;  %v1105_v33 = vmul.f32 0.1, %v1089_v25  ;;  %vm3804_vm15 = vcmp.gt.f32.partialorder %v3393_v17, 0.0 }
 0x248   : > { %vm1096_vm7 = vcmp.ge.f32.partialorder %v1088_v31, 0.0  ;;  %v1104_v35 = vmul.f32 0.1, %v1088_v31  ;;  %v2873_v36 = vpop.f32.mrb[6].mxu1  ;;  %v1141_v41 = vadd.f32 %v1139_v27, %v1126_v28  ;;  %v3408_v22 = vsel %vm3804_vm15, 1.0, %v3097_v53 }
 0x249   : > { %v1140_v37 = vadd.f32 %v1139_v27, %v1125_v32  ;;  %v1113_v38 = vsel %vm1097_vm1, %v1089_v25, %v1105_v33  ;;  %v1091_v39 = vadd.f32 %v2873_v36, %v2742_v8  ;;  %v1061_v40 = vpop.f32.mrb[7].mxu1  ;;  %vm3805_vm2 = vcmp.gt.f32.partialorder %v3410_v23, 0.0 }
 0x24a   : > { %v1112_v44 = vsel %vm1096_vm7, %v1088_v31, %v1104_v35  ;;  %v1090_v45 = vadd.f32 %v2742_v8, %v1061_v40  ;;  %v1128_v46 = vmul.f32 %v1124_v20, %v1113_v38  ;;  %v3412_v24 = vpop.xlane.xlu1 %684  ;;  %v3420_v26 = vsel %vm3805_vm2, 1.0, %v3097_v53  ;;  %v3431_v32 = vpop.xlane.xlu0 %681 }
 0x24b   : > { %2881 = vmatprep.mubr.msk.f32.mxu0 %vm950_vm4, %v1140_v37  ;;  %v1127_v47 = vmul.f32 %v1124_v20, %v1112_v44  ;;  %vm1099_vm8 = vcmp.ge.f32.partialorder %v1091_v39, 0.0  ;;  %v1107_v48 = vmul.f32 0.1, %v1091_v39  ;;  %vm3801_vm3 = vcmp.gt.f32.partialorder %v3412_v24, 0.0 }
 0x24c   : > { %2882 = vmatmul.mubr.msk.f32.vlgmr.msra.gmra.mrb[6].mxu0 %vm950_vm4, %v1141_v41  ;;  %vm1098_vm9 = vcmp.ge.f32.partialorder %v1090_v45, 0.0  ;;  %v1106_v49 = vmul.f32 0.1, %v1090_v45  ;;  %v2876_v51 = vpop.f32.mrb[8].mxu1  ;;  %v1143_v16 = vadd.f32 %v1139_v27, %v1128_v46  ;;  %v1516_v28 = vrot.slane %v3420_v26, %v3369_v4 }
 0x24d   : > { %v1115_v52 = vsel %vm1099_vm8, %v1091_v39, %v1107_v48  ;;  %v1093_v54 = vadd.f32 %v2876_v51, %v2742_v8  ;;  %v1071_v55 = vpop.f32.mrb[9].mxu1  ;;  %v1142_v50 = vadd.f32 %v1139_v27, %v1127_v47  ;;  %vm1539_vm6 = vcmask 1044484   ;;  %v2751_v48 = vld [vmem:[%s3785_s7] ss:$0 sm:$0xff] }
 0x24e   : > { %v1130_v56 = vmul.f32 %v1124_v20, %v1115_v52  ;;  %v1114_v57 = vsel %vm1098_vm9, %v1090_v45, %v1106_v49  ;;  %v1092_v13 = vadd.f32 %v2742_v8, %v1071_v55  ;;  %v3380_v8 = vsel %vm689_vm12, 1.0, %v3097_v53  ;;  %v3445_v39 = vpop.xlane.xlu0 %687 }
 0x24f   : > { %v1129_v18 = vmul.f32 %v1124_v20, %v1114_v57  ;;  %vm1101_vm10 = vcmp.ge.f32.partialorder %v1093_v54, 0.0  ;;  %v1109_v29 = vmul.f32 0.1, %v1093_v54  ;;  %2884 = vmatprep.mubr.msk.f32.mxu0 %vm950_vm4, %v1142_v50  ;;  %v1504_v11 = vrot.slane %v3380_v8, %v3369_v4 }
 0x250   : > { %vm1100_vm11 = vcmp.ge.f32.partialorder %v1092_v13, 0.0  ;;  %v1108_v58 = vmul.f32 0.1, %v1092_v13  ;;  %2885 = vmatmul.mubr.msk.f32.gmra.mrb[8].mxu0 %vm950_vm4, %v1143_v16  ;;  %v1145_v61 = vadd.f32 %v1139_v27, %v1130_v56  ;;  %v3429_v31 = vsel %vm3801_vm3, 1.0, %v3097_v53 }
 0x251   : > { %v1117_v59 = vsel %vm1101_vm10, %v1093_v54, %v1109_v29  ;;  %v1144_v30 = vadd.f32 %v1139_v27, %v1129_v18  ;;  %vm3802_vm1 = vcmp.gt.f32.partialorder %v3431_v32, 0.0  ;;  %v1528_v37 = vrot.slane %v3429_v31, %v3369_v4 }
 0x252   : > { %v1132_v15 = vmul.f32 %v1124_v20, %v1117_v59  ;;  %v1116_v60 = vsel %vm1100_vm11, %v1092_v13, %v1108_v58  ;;  %v3439_v36 = vsel %vm3802_vm1, 1.0, %v3097_v53  ;;  %vm1541_vm7 = vcmask 1045509  }
 0x253   : > { %v1131_v62 = vmul.f32 %v1124_v20, %v1116_v60  ;;  %2887 = vmatprep.mubr.msk.f32.mxu0 %vm950_vm4, %v1144_v30  ;;  %v1512_v20 = vrot.slane %v3400_v19, %v3369_v4  ;;  %v1524_v38 = vrot.slane %v3439_v36, %v3369_v4  ;;  %vm1543_vm8 = vcmask 1046534  }
 0x254   : > { %2888 = vmatmul.mubr.msk.f32.gmra.mrb[10].mxu0 %vm950_vm4, %v1145_v61  ;;  %v1147_v0 = vadd.f32 %v1139_v27, %v1132_v15  ;;  %vm3800_vm9 = vcmp.gt.f32.partialorder %v3445_v39, 0.0  ;;  %vm1545_vm10 = vcmask 1047559   ;;  %vm3803_vm11 = vcmask 64512  }
 0x255   : > { %v1146_v63 = vadd.f32 %v1139_v27, %v1131_v62  ;;  %v1520_v27 = vrot.slane %v3408_v22, %v3369_v4  ;;  %v3452_v41 = vsel %vm3800_vm9, 1.0, %v3097_v53  ;;  %vm1323_vm1 = vcmask 261120  }
 0x256   : > { %v1532_v45 = vrot.slane %v3452_v41, %v3369_v4 }
 0x257   : > { %2890 = vmatprep.mubr.msk.f32.mxu0 %vm950_vm4, %v1146_v63 }
 0x258   : > { %2891 = vmatmul.mubr.msk.f32.gmra.mrb[12].mxu0 %vm950_vm4, %v1147_v0  ;;  %vm1533_vm4 = vcmask 1041409  }
 0x259   : > { %v1534_v21 = vsel %vm1533_vm4, %v1508_v12, %v1504_v11 }
 0x25a   : > { %v1536_v25 = vsel %vm1535_vm0, %v1512_v20, %v1534_v21 }
 0x25b   : > { %v1538_v33 = vsel %vm1537_vm5, %v1516_v28, %v1536_v25 }
 0x25c   : > { %v1540_v35 = vsel %vm1539_vm6, %v1520_v27, %v1538_v33 }
 0x25d   : > { %v1542_v40 = vsel %vm1541_vm7, %v1524_v38, %v1540_v35  ;;  %v1649_v38 = vld [vmem:[%s3788_s10] sm:$0xff] }
 0x25e   : > { %v1544_v44 = vsel %vm1543_vm8, %v1528_v37, %v1542_v40  ;;  %v1650_v40 = vld [vmem:[%s3788_s10 + $0x8] sm:$0xff] }
 0x25f   : > { %v1546_v46 = vsel %vm1545_vm10, %v1532_v45, %v1544_v44  ;;  %v2982_v44 = vpack.c.bf16 %v1650_v40, %v1649_v38  ;;  %v1651_v45 = vld [vmem:[%s3788_s10 + $0x10] sm:$0xff] }
 0x260   : > { %v1549_v47 = vsel %vm3803_vm11, %v1546_v46, 0.0  ;;  %v1652_v46 = vld [vmem:[%s3788_s10 + $0x18] sm:$0xff] }
 0x261   : > { %1550 = vadd.xlane.f32.xlu1 %v1549_v47  ;;  %2983 = vmatprep.subr.bf16.mxu0 %v2982_v44  ;;  %v2986_v47 = vpack.c.bf16 %v1652_v46, %v1651_v45 }
 0x262   : > { %2985 = vmatpush3.bf16.msra.mxu0 %v2982_v44 }
 0x263   : > { %2987 = vmatprep.subr.bf16.mxu0 %v2986_v47 }
 0x266   : > { %2989 = vmatpush3.bf16.msra.mxu0 %v2986_v47 }
 0x31f   : > { %v2883_v49 = vpop.f32.mrb[6].mxu0 }
 0x320   : > { %v1287_v51 = vadd.f32 %v2883_v49, %v2751_v48  ;;  %v1241_v52 = vpop.f32.mrb[7].mxu0  ;;  %v1798_v49 = vld [vmem:[%s3789_s11 + $0x8] sm:$0xff] }
 0x321   : > { %v1286_v54 = vadd.f32 %v2751_v48, %v1241_v52  ;;  %v1799_v52 = vld [vmem:[%s3789_s11 + $0x10] sm:$0xff] }
 0x322   : > { %v1303_v55 = vmul.f32 0.1, %v1287_v51  ;;  %vm1295_vm9 = vcmp.ge.f32.partialorder %v1287_v51, 0.0 }
 0x323   : > { %vm1294_vm3 = vcmp.ge.f32.partialorder %v1286_v54, 0.0  ;;  %v1302_v50 = vmul.f32 0.1, %v1286_v54  ;;  %v2886_v56 = vpop.f32.mrb[8].mxu0 }
 0x324   : > { %v1289_v57 = vadd.f32 %v2886_v56, %v2751_v48  ;;  %v1251_v13 = vpop.f32.mrb[9].mxu0  ;;  %v1311_v18 = vsel %vm1295_vm9, %v1287_v51, %v1303_v55  ;;  %v3098_v55 = vmov 0.0|0.0   ;;  %v1551_v56 = vpop.xlane.xlu1 %1550 }
 0x325   : > { %v1310_v16 = vsel %vm1294_vm3, %v1286_v54, %v1302_v50  ;;  %v1288_v29 = vadd.f32 %v2751_v48, %v1251_v13  ;;  %v1800_v54 = vld [vmem:[%s3789_s11 + $0x18] sm:$0xff]  ;;  %2990 = vmatprep.subr.bf16.mxu1 %v3098_v55  ;;  %3002 = vmatprep.subr.bf16.mxu0 %v3098_v55  ;;  %v3505_v13 = vadd.f32 1e-10, %v1551_v56 }
 0x326   : > { %2901 = vmatprep.mubr.msk.f32.mxu1 %vm1323_vm1, %v1310_v16  ;;  %v1305_v58 = vmul.f32 0.1, %v1289_v57  ;;  %vm1297_vm11 = vcmp.ge.f32.partialorder %v1289_v57, 0.0  ;;  %v2994_v50 = vpack.c.bf16 %v1800_v54, %v1799_v52 }
 0x327   : > { %2902 = vmatmul.mubr.msk.f32.vlgmr.msra.gmra.mrb[10].mxu1 %vm1323_vm1, %v1311_v18  ;;  %vm1296_vm15 = vcmp.ge.f32.partialorder %v1288_v29, 0.0  ;;  %v1304_v59 = vmul.f32 0.1, %v1288_v29  ;;  %v2889_v30 = vpop.f32.mrb[10].mxu0  ;;  %3025 = vrcp.f32 %v3505_v13  ;;  %v1622_v45 = vrot.slane %v3505_v13, 5 }
 0x328   : > { %v1291_v15 = vadd.f32 %v2889_v30, %v2751_v48  ;;  %v1261_v60 = vpop.f32.mrb[11].mxu0  ;;  %v1313_v0 = vsel %vm1297_vm11, %v1289_v57, %v1305_v58  ;;  %v3503_v57 = vld [vmem:[%s3787_s9] ss:$0 sm:$0xff]  ;;  %v1618_v30 = vrot.slane %v3505_v13, 1 }
 0x329   : > { %v1290_v61 = vadd.f32 %v2751_v48, %v1261_v60  ;;  %v1312_v62 = vsel %vm1296_vm15, %v1288_v29, %v1304_v59  ;;  %v1619_v60 = vrot.slane %v3505_v13, 2 }
 0x32a   : > { %v1307_v63 = vmul.f32 0.1, %v1291_v15  ;;  %2904 = vmatprep.mubr.msk.f32.mxu1 %vm1323_vm1, %v1312_v62  ;;  %vm1299_vm3 = vcmp.ge.f32.partialorder %v1291_v15, 0.0  ;;  %3027 = vrcp.f32 %v1618_v30 }
 0x32b   : > { %vm1298_vm9 = vcmp.ge.f32.partialorder %v1290_v61, 0.0  ;;  %v1306_v2 = vmul.f32 0.1, %v1290_v61  ;;  %v2892_v11 = vpop.f32.mrb[12].mxu0  ;;  %2905 = vmatmul.mubr.msk.f32.gmra.mrb[12].mxu1 %vm1323_vm1, %v1313_v0  ;;  %3029 = vrcp.f32 %v1619_v60 }
 0x32c   : > { %v1293_v12 = vadd.f32 %v2892_v11, %v2751_v48  ;;  %v1271_v20 = vpop.f32.mrb[13].mxu0  ;;  %v1315_v28 = vsel %vm1299_vm3, %v1291_v15, %v1307_v63 }
 0x32d   : > { %v1292_v21 = vadd.f32 %v2751_v48, %v1271_v20  ;;  %v1314_v25 = vsel %vm1298_vm9, %v1290_v61, %v1306_v2  ;;  %v1797_v48 = vld [vmem:[%s3789_s11] sm:$0xff] }
 0x32e   : > { %v1309_v27 = vmul.f32 0.1, %v1293_v12  ;;  %2907 = vmatprep.mubr.msk.f32.mxu1 %vm1323_vm1, %v1314_v25  ;;  %vm1301_vm2 = vcmp.ge.f32.partialorder %v1293_v12, 0.0  ;;  %v2991_v51 = vpack.c.bf16 %v1798_v49, %v1797_v48  ;;  %v1621_v25 = vrot.slane %v3505_v13, 4 }
 0x32f   : > { %vm1300_vm15 = vcmp.ge.f32.partialorder %v1292_v21, 0.0  ;;  %v1308_v33 = vmul.f32 0.1, %v1292_v21  ;;  %2908 = vmatmul.mubr.msk.f32.gmra.mrb[14].mxu1 %vm1323_vm1, %v1315_v28 }
 0x330   : > { %v1317_v37 = vsel %vm1301_vm2, %v1293_v12, %v1309_v27  ;;  %vm3099_vm2 = vmmov 0   ;;  %2992 = vmatpush3.bf16.msra.mxu1 %v2991_v51  ;;  %v1620_v12 = vrot.slane %v3505_v13, 3 }
 0x331   : > { %v1316_v35 = vsel %vm1300_vm15, %v1292_v21, %v1308_v33  ;;  %2993 = vmatprep.subr.bf16.mxu1 %v3098_v55 }
 0x332   : > { %2910 = vmatprep.mubr.msk.f32.mxu1 %vm1323_vm1, %v1316_v35  ;;  %3031 = vrcp.f32 %v1620_v12 }
 0x333   : > { %2911 = vmatmul.mubr.msk.f32.gmra.mrb[16].mxu1 %vm1323_vm1, %v1317_v37  ;;  %3033 = vrcp.f32 %v1621_v25 }
 0x334   : > { %2941 = vmatprep.mubr.msk.f32.mxu1 %vm3099_vm2, %v3097_v53  ;;  %2995 = vmatpush3.bf16.msra.mxu1 %v2994_v50  ;;  %3035 = vrcp.f32 %v1622_v45 }
 0x335   : > { %2996 = vmatprep.subr.bf16.mxu1 %v3098_v55 }
 0x3fa   : > { %v2903_v16 = vpop.f32.mrb[10].mxu1 }
 0x3fb   : > { %v1460_v18 = vadd.f32 %v2903_v16, %v3503_v57  ;;  %v1414_v29 = vpop.f32.mrb[11].mxu1 }
 0x3fc   : > { %v1459_v58 = vadd.f32 %v3503_v57, %v1414_v29 }
 0x3fd   : > { %vm1468_vm11 = vcmp.ge.f32.partialorder %v1460_v18, 0.0  ;;  %v1476_v59 = vmul.f32 0.1, %v1460_v18 }
 0x3fe   : > { %vm1467_vm3 = vcmp.ge.f32.partialorder %v1459_v58, 0.0  ;;  %v1475_v15 = vmul.f32 0.1, %v1459_v58  ;;  %v2906_v62 = vpop.f32.mrb[12].mxu1 }
 0x3ff   : > { %v3511_v61 = vsel %vm1468_vm11, %v1460_v18, %v1476_v59  ;;  %v1462_v0 = vadd.f32 %v2906_v62, %v3503_v57  ;;  %v1424_v2 = vpop.f32.mrb[13].mxu1 }
 0x400   : > { %v1554_v63 = vmul.f32 %v3385_v1, %v3511_v61  ;;  %v3517_v11 = vsel %vm1467_vm3, %v1459_v58, %v1475_v15  ;;  %v1461_v20 = vadd.f32 %v3503_v57, %v1424_v2 }
 0x401   : > { %v1553_v21 = vmul.f32 %v3380_v8, %v3517_v11  ;;  %2921 = vmatprep.mubr.msk.f32.mxu0 %vm1323_vm1, %v3517_v11  ;;  %vm1470_vm9 = vcmp.ge.f32.partialorder %v1462_v0, 0.0  ;;  %v1478_v27 = vmul.f32 0.1, %v1462_v0 }
 0x402   : > { %v1568_v1 = vsel %vm1323_vm1, %v1554_v63, 0.0  ;;  %2922 = vmatmul.mubr.msk.f32.vlgmr.msra.gmra.mrb[14].mxu0 %vm1323_vm1, %v3511_v61  ;;  %vm1469_vm15 = vcmp.ge.f32.partialorder %v1461_v20, 0.0  ;;  %v1477_v33 = vmul.f32 0.1, %v1461_v20  ;;  %v2909_v37 = vpop.f32.mrb[14].mxu1 }
 0x403   : > { %v1569_v28 = vrot.slane %v1568_v1, 4  ;;  %v1561_v35 = vsel %vm1323_vm1, %v1553_v21, 0.0  ;;  %v1464_v38 = vadd.f32 %v2909_v37, %v3503_v57  ;;  %v1434_v40 = vpop.f32.mrb[15].mxu1  ;;  %v3531_v44 = vsel %vm1470_vm9, %v1462_v0, %v1478_v27 }
 0x404   : > { %v1562_v8 = vrot.slane %v1561_v35, 4  ;;  %v1463_v47 = vadd.f32 %v3503_v57, %v1434_v40  ;;  %v3535_v48 = vsel %vm1469_vm15, %v1461_v20, %v1477_v33  ;;  %v1556_v49 = vmul.f32 %v3420_v26, %v3531_v44 }
 0x405   : > { %v1570_v46 = vadd.f32 %v1569_v28, %v1568_v1  ;;  %vm1472_vm11 = vcmp.ge.f32.partialorder %v1464_v38, 0.0  ;;  %v1480_v52 = vmul.f32 0.1, %v1464_v38  ;;  %v1555_v54 = vmul.f32 %v3400_v19, %v3535_v48  ;;  %2924 = vmatprep.mubr.msk.f32.mxu0 %vm1323_vm1, %v3535_v48  ;;  %v3026_v19 = vpop.eup %3025 }
 0x406   : > { %v1563_v51 = vadd.f32 %v1562_v8, %v1561_v35  ;;  %vm1471_vm3 = vcmp.ge.f32.partialorder %v1463_v47, 0.0  ;;  %v1479_v56 = vmul.f32 0.1, %v1463_v47  ;;  %v2912_v16 = vpop.f32.mrb[16].mxu1  ;;  %v1582_v18 = vsel %vm1323_vm1, %v1556_v49, 0.0  ;;  %2925 = vmatmul.mubr.msk.f32.gmra.mrb[16].mxu0 %vm1323_vm1, %v3531_v44  ;;  %v3028_v21 = vpop.eup %3027 }
 0x407   : > { %v1571_v50 = vrot.slane %v1570_v46, 2  ;;  %v1575_v26 = vsel %vm1323_vm1, %v1555_v54, 0.0  ;;  %v1466_v58 = vadd.f32 %v2912_v16, %v3503_v57  ;;  %v1583_v59 = vrot.slane %v1582_v18, 4  ;;  %v1444_v30 = vpop.f32.mrb[17].mxu1  ;;  %v3030_v33 = vpop.eup %3029 }
 0x408   : > { %v1564_v29 = vrot.slane %v1563_v51, 2  ;;  %v1576_v60 = vrot.slane %v1575_v26, 4  ;;  %v1465_v62 = vadd.f32 %v3503_v57, %v1444_v30  ;;  %v3549_v63 = vsel %vm1471_vm3, %v1463_v47, %v1479_v56  ;;  %v3032_v25 = vpop.eup %3031 }
 0x409   : > { %v1572_v15 = vadd.f32 %v1571_v50, %v1570_v46  ;;  %v1584_v2 = vadd.f32 %v1583_v59, %v1582_v18  ;;  %2927 = vmatprep.mubr.msk.f32.mxu0 %vm1323_vm1, %v3549_v63  ;;  %v1623_v20 = vrot.slane %v3505_v13, 6  ;;  %vm1474_vm15 = vcmp.ge.f32.partialorder %v1466_v58, 0.0 }
 0x40a   : > { %v1565_v0 = vadd.f32 %v1564_v29, %v1563_v51  ;;  %v1577_v27 = vadd.f32 %v1576_v60, %v1575_v26  ;;  %vm1473_vm9 = vcmp.ge.f32.partialorder %v1465_v62, 0.0  ;;  %v1481_v28 = vmul.f32 0.1, %v1465_v62 }
 0x40b   : > { %v1573_v1 = vrot.slane %v1572_v15, 1  ;;  %v1585_v35 = vrot.slane %v1584_v2, 2  ;;  %v1557_v57 = vmul.f32 %v3408_v22, %v3549_v63  ;;  %v3557_v37 = vsel %vm1472_vm11, %v1464_v38, %v1480_v52 }
 0x40c   : > { %v1578_v12 = vrot.slane %v1577_v27, 2  ;;  %v1482_v8 = vmul.f32 0.1, %v1466_v58  ;;  %v1558_v40 = vmul.f32 %v3439_v36, %v3557_v37  ;;  %2928 = vmatmul.mubr.msk.f32.gmra.mrb[18].mxu0 %vm1323_vm1, %v3557_v37  ;;  %v3563_v46 = vsel %vm1473_vm9, %v1465_v62, %v1481_v28 }
 0x40d   : > { %v1566_v47 = vrot.slane %v1565_v0, 1  ;;  %v1586_v49 = vadd.f32 %v1585_v35, %v1584_v2  ;;  %v1589_v51 = vsel %vm1323_vm1, %v1557_v57, 0.0  ;;  %v1559_v22 = vmul.f32 %v3429_v31, %v3563_v46  ;;  %2930 = vmatprep.mubr.msk.f32.mxu0 %vm1323_vm1, %v3563_v46 }
 0x40e   : > { %v1574_v38 = vadd.f32 %v1573_v1, %v1572_v15  ;;  %v1579_v52 = vadd.f32 %v1578_v12, %v1577_v27  ;;  %v1590_v54 = vrot.slane %v1589_v51, 4  ;;  %v1596_v36 = vsel %vm1323_vm1, %v1558_v40, 0.0 }
 0x40f   : > { %v1587_v50 = vrot.slane %v1586_v49, 1  ;;  %v1597_v56 = vrot.slane %v1596_v36, 4  ;;  %v1603_v16 = vsel %vm1323_vm1, %v1559_v22, 0.0  ;;  %v1567_v31 = vadd.f32 %v1566_v47, %v1565_v0 }
 0x410   : > { %v1580_v18 = vrot.slane %v1579_v52, 1  ;;  %v1591_v29 = vadd.f32 %v1590_v54, %v1589_v51  ;;  %v1604_v26 = vrot.slane %v1603_v16, 4  ;;  %3037 = vrcp.f32 %v1623_v20 }
 0x411   : > { %v1598_v59 = vadd.f32 %v1597_v56, %v1596_v36  ;;  %v3575_v30 = vsel %vm1474_vm15, %v1466_v58, %v1482_v8  ;;  %v1636_v15 = vmul.f32 %v3028_v21, %v1574_v38  ;;  %v1588_v1 = vadd.f32 %v1587_v50, %v1586_v49 }
 0x412   : > { %v1581_v60 = vadd.f32 %v1580_v18, %v1579_v52  ;;  %v1592_v62 = vrot.slane %v1591_v29, 2  ;;  %v1605_v2 = vadd.f32 %v1604_v26, %v1603_v16  ;;  %2931 = vmatmul.mubr.msk.f32.gmra.mrb[20].mxu0 %vm1323_vm1, %v3575_v30  ;;  %v1560_v45 = vmul.f32 %v3452_v41, %v3575_v30  ;;  %v3034_v52 = vpop.eup %3033 }
 0x413   : > { %v1599_v27 = vrot.slane %v1598_v59, 2  ;;  %v1624_v0 = vrot.slane %v3505_v13, 7  ;;  %2963 = vmatprep.mubr.msk.f32.mxu0 %vm3099_vm2, %v3097_v53  ;;  %v1634_v28 = vmul.f32 %v3026_v19, %v1567_v31  ;;  %v1809_v12 = vrot.slane %v1636_v15, 7 }
 0x414   : > { %v1638_v58 = vmul.f32 %v3030_v33, %v1581_v60  ;;  %v1593_v20 = vadd.f32 %v1592_v62, %v1591_v29  ;;  %v1606_v21 = vrot.slane %v1605_v2, 2  ;;  %v1610_v57 = vsel %vm1323_vm1, %v1560_v45, 0.0  ;;  %v3036_v33 = vpop.eup %3035 }
 0x415   : > { %v1600_v35 = vadd.f32 %v1599_v27, %v1598_v59  ;;  %v1611_v47 = vrot.slane %v1610_v57, 4  ;;  %v1640_v51 = vmul.f32 %v3032_v25, %v1588_v1  ;;  %3039 = vrcp.f32 %v1624_v0 }
 0x416   : > { %v1594_v8 = vrot.slane %v1593_v20, 1  ;;  %v1607_v40 = vadd.f32 %v1606_v21, %v1605_v2  ;;  %v1811_v49 = vrot.slane %v1638_v58, 6  ;;  %v1810_v36 = vsel %vm1533_vm4, %v1809_v12, %v1634_v28 }
 0x417   : > { %v1601_v22 = vrot.slane %v1600_v35, 1  ;;  %v1612_v38 = vadd.f32 %v1611_v47, %v1610_v57  ;;  %v1813_v18 = vrot.slane %v1640_v51, 5  ;;  %vm3817_vm11 = vcmp.gt.f32.partialorder %v3393_v17, 0.0 }
 0x418   : > { %v1595_v41 = vadd.f32 %v1594_v8, %v1593_v20  ;;  %v1608_v13 = vrot.slane %v1607_v40, 1  ;;  %v1812_v29 = vsel %vm1535_vm0, %v1811_v49, %v1810_v36  ;;  %vm3821_vm3 = vcmask 64512  }
 0x419   : > { %v1602_v54 = vadd.f32 %v1601_v22, %v1600_v35  ;;  %v1613_v56 = vrot.slane %v1612_v38, 2  ;;  %v1814_v62 = vsel %vm1537_vm5, %v1813_v18, %v1812_v29  ;;  %v3100_v35 = vmov 0   ;;  %vm3822_vm9 = vmmov %vm3821_vm3 }
 0x41a   : > { %v1642_v19 = vmul.f32 %v3034_v52, %v1595_v41  ;;  %v1609_v50 = vadd.f32 %v1608_v13, %v1607_v40  ;;  %v3038_v16 = vpop.eup %3037  ;;  %3023 = vset.pattern.permute.xlu0 %v3100_v35  ;;  %3024 = vset.pattern.permute.xlu1 %v3100_v35  ;;  %v3101_v41 = vmov 1966171168  }
 0x41b   : > { %v1644_v31 = vmul.f32 %v3036_v33, %v1602_v54  ;;  %v1614_v15 = vadd.f32 %v1613_v56, %v1612_v38  ;;  %v1898_v13 = vunpack.c.l.s4 %v3101_v41 }
 0x41c   : > { %v1815_v26 = vrot.slane %v1642_v19, 4  ;;  %v1646_v59 = vmul.f32 %v3038_v16, %v1609_v50 }
 0x41d   : > { %v1615_v60 = vrot.slane %v1614_v15, 1  ;;  %v1817_v1 = vrot.slane %v1644_v31, 3  ;;  %v1899_v38 = vunpack.c.0.s8 %v1898_v13 }
 0x41e   : > { %v1816_v2 = vsel %vm1539_vm6, %v1815_v26, %v1814_v62  ;;  %v1819_v25 = vrot.slane %v1646_v59, 2 }
 0x41f   : > { %v1616_v27 = vadd.f32 %v1615_v60, %v1614_v15  ;;  %v3040_v45 = vpop.eup %3039  ;;  %v1818_v58 = vsel %vm1541_vm7, %v1817_v1, %v1816_v2  ;;  %v1902_v52 = vsub.s32 %v1899_v38, %v3224_v3 }
 0x420   : > { %v1820_v20 = vsel %vm1543_vm8, %v1819_v25, %v1818_v58 }
 0x421   : > { %v1648_v0 = vmul.f32 %v3040_v45, %v1616_v27 }
 0x423   : > { %v1821_v21 = vrot.slane %v1648_v0, 1 }
 0x425   : > { %v1822_v28 = vsel %vm1545_vm10, %v1821_v21, %v1820_v20 }
 0x426   : > { %2942 = vmatmul.mubr.msk.f32.vlgmr.msra.gmra.mrb[18].mxu1 %vm1323_vm1, %v1822_v28 }
 0x427   : > { %2952 = vmatprep.mubr.msk.f32.mxu1 %vm3099_vm2, %v3097_v53  ;;  %v2769_v53 = vld [vmem:[%s3790_s12] ss:$0 sm:$0xff]  ;;  %vm3816_vm2 = vcmp.gt.f32.partialorder %v3410_v23, 0.0 }
 0x4d5   : > { %v2923_v57 = vpop.f32.mrb[14].mxu0 }
 0x4d6   : > { %v1744_v12 = vpop.f32.mrb[15].mxu0  ;;  %v1790_v18 = vadd.f32 %v2923_v57, %v2769_v53 }
 0x4d7   : > { %v1789_v29 = vadd.f32 %v2769_v53, %v1744_v12 }
 0x4d9   : > { %v2926_v8 = vpop.f32.mrb[16].mxu0 }
 0x4da   : > { %v1754_v40 = vpop.f32.mrb[17].mxu0  ;;  %v1792_v26 = vadd.f32 %v2926_v8, %v2769_v53 }
 0x4db   : > { %v1791_v31 = vadd.f32 %v2769_v53, %v1754_v40 }
 0x4df   : > { %v2929_v47 = vpop.f32.mrb[18].mxu0 }
 0x4e0   : > { %v1764_v49 = vpop.f32.mrb[19].mxu0  ;;  %v1794_v2 = vadd.f32 %v2929_v47, %v2769_v53 }
 0x4e1   : > { %v1793_v25 = vadd.f32 %v2769_v53, %v1764_v49 }
 0x4e5   : > { %v2932_v51 = vpop.f32.mrb[20].mxu0 }
 0x4e6   : > { %v1774_v22 = vpop.f32.mrb[21].mxu0  ;;  %v1796_v1 = vadd.f32 %v2932_v51, %v2769_v53 }
 0x4e7   : > { %v1795_v21 = vadd.f32 %v2769_v53, %v1774_v22  ;;  %v2771_v53 = vld [vmem:[%s3791_s13] ss:$0 sm:$0xff] }
 0x4f9   : > { %v1891_v54 = vpop.f32.mrb[18].mxu1 }
 0x4fa   : > { %v1896_v33 = vcombine.high %v1891_v54, %v1891_v54  ;;  %v1903_v36 = vrot.slane %v1891_v54, %v1902_v52  ;;  %v2943_v19 = vpop.f32.mrb[19].mxu1 }
 0x4fc   : > { %v1910_v50 = vrot.slane %v1896_v33, %v1902_v52  ;;  %v1911_v56 = vcombine.high %v1903_v36, %v1903_v36  ;;  %v1919_v16 = vrot.slane %v1903_v36, %v1902_v52 }
 0x4fe   : > { %v1912_v59 = vcombine.high %v1910_v50, %v1910_v50  ;;  %v1926_v15 = vrot.slane %v1910_v50, %v1902_v52  ;;  %v1933_v60 = vrot.slane %v1911_v56, %v1902_v52  ;;  %v1941_v62 = vcombine.high %v1919_v16, %v1919_v16 }
 0x4ff   : > { %v1948_v27 = vrot.slane %v1919_v16, %v3232_v5 }
 0x500   : > { %v1940_v45 = vrot.slane %v1912_v59, %v1902_v52  ;;  %v1942_v0 = vcombine.high %v1926_v15, %v1926_v15  ;;  %v1943_v58 = vcombine.high %v1933_v60, %v1933_v60  ;;  %v1952_v20 = vrot.slane %v1933_v60, %v3232_v5 }
 0x501   : > { %v1956_v28 = vrot.slane %v1941_v62, %v3232_v5  ;;  %v1964_v35 = vrot.slane %v1926_v15, %v3232_v5  ;;  %v1985_v57 = vadd.f32 %v1948_v27, %v1789_v29 }
 0x502   : > { %v1944_v12 = vcombine.high %v1940_v45, %v1940_v45  ;;  %v1960_v8 = vrot.slane %v1943_v58, %v3232_v5  ;;  %v1968_v40 = vrot.slane %v1940_v45, %v3232_v5  ;;  %v1972_v47 = vrot.slane %v1942_v0, %v3232_v5 }
 0x503   : > { %v1986_v49 = vadd.f32 %v1952_v20, %v1790_v18  ;;  %v1987_v51 = vadd.f32 %v1956_v28, %v1791_v31  ;;  %v1989_v41 = vadd.f32 %v1964_v35, %v1793_v25  ;;  %3041 = vtanh.f32 %v1985_v57  ;;  %v2772_v35 = vld [vmem:[#allocation2] ss:$0 sm:$0xff] }
 0x504   : > { %v1976_v13 = vrot.slane %v1944_v12, %v3232_v5  ;;  %v1988_v38 = vadd.f32 %v1960_v8, %v1792_v26  ;;  %v1990_v22 = vadd.f32 %v1968_v40, %v1794_v2  ;;  %v1991_v52 = vadd.f32 %v1972_v47, %v1795_v21 }
 0x505   : > { %3043 = vtanh.f32 %v1986_v49 }
 0x506   : > { %v1992_v54 = vadd.f32 %v1976_v13, %v1796_v1  ;;  %3045 = vtanh.f32 %v1987_v51 }
 0x507   : > { %3047 = vtanh.f32 %v1988_v38 }
 0x508   : > { %3049 = vtanh.f32 %v1989_v41 }
 0x509   : > { %3051 = vtanh.f32 %v1990_v22 }
 0x50a   : > { %3053 = vtanh.f32 %v1991_v52 }
 0x50b   : > { %3055 = vtanh.f32 %v1992_v54 }
 0x50d   : > { %v3042_v33 = vpop.eup %3041 }
 0x50e   : > { %v2008_v36 = vmul.f32 %v3042_v33, %v2771_v53 }
 0x50f   : > { %v3044_v19 = vpop.eup %3043 }
 0x510   : > { %v3046_v50 = vpop.eup %3045  ;;  %v2016_v56 = vsel %vm1323_vm1, %v2008_v36, 0.0  ;;  %v2009_v16 = vmul.f32 %v3044_v19, %v2771_v53 }
 0x511   : > { %v3048_v18 = vpop.eup %3047  ;;  %2017 = vadd.xlane.f32.xlu0 %v2016_v56  ;;  %v2010_v29 = vmul.f32 %v3046_v50, %v2771_v53 }
 0x512   : > { %v3050_v26 = vpop.eup %3049  ;;  %v2019_v31 = vsel %vm1323_vm1, %v2009_v16, 0.0  ;;  %v2011_v59 = vmul.f32 %v3048_v18, %v2771_v53 }
 0x513   : > { %v3052_v15 = vpop.eup %3051  ;;  %2020 = vadd.xlane.f32.xlu1 %v2019_v31  ;;  %v2022_v60 = vsel %vm1323_vm1, %v2010_v29, 0.0  ;;  %v2012_v62 = vmul.f32 %v3050_v26, %v2771_v53 }
 0x514   : > { %v3054_v2 = vpop.eup %3053  ;;  %v2025_v25 = vsel %vm1323_vm1, %v2011_v59, 0.0  ;;  %v2013_v1 = vmul.f32 %v3052_v15, %v2771_v53 }
 0x515   : > { %2023 = vadd.xlane.f32.xlu0 %v2022_v60  ;;  %v3056_v27 = vpop.eup %3055  ;;  %v2028_v45 = vsel %vm1323_vm1, %v2012_v62, 0.0  ;;  %v2014_v0 = vmul.f32 %v3054_v2, %v2771_v53 }
 0x516   : > { %v2031_v58 = vsel %vm1323_vm1, %v2013_v1, 0.0  ;;  %v2015_v20 = vmul.f32 %v3056_v27, %v2771_v53 }
 0x517   : > { %2026 = vadd.xlane.f32.xlu1 %v2025_v25  ;;  %v2034_v21 = vsel %vm1323_vm1, %v2014_v0, 0.0  ;;  %v2148_v0 = vsub.s32 7, %v3224_v3 }
 0x518   : > { %v2037_v28 = vsel %vm1323_vm1, %v2015_v20, 0.0 }
 0x519   : > { %2029 = vadd.xlane.f32.xlu0 %v2028_v45 }
 0x51b   : > { %2032 = vadd.xlane.f32.xlu1 %v2031_v58 }
 0x51d   : > { %2035 = vadd.xlane.f32.xlu0 %v2034_v21 }
 0x51f   : > { %2038 = vadd.xlane.f32.xlu1 %v2037_v28 }
 0x533   : > { %2047 = vperm.xlu0 %3023, %v2772_v35  }
 0x59e   : > { %v2018_v57 = vpop.xlane.xlu0 %2017 }
 0x5a0   : > { %v2021_v8 = vpop.xlane.xlu1 %2020 }
 0x5a2   : > { %v2024_v12 = vpop.xlane.xlu0 %2023 }
 0x5a4   : > { %v2027_v47 = vpop.xlane.xlu1 %2026 }
 0x5a6   : > { %v2030_v40 = vpop.xlane.xlu0 %2029 }
 0x5a8   : > { %v2033_v51 = vpop.xlane.xlu1 %2032 }
 0x5aa   : > { %v2036_v49 = vpop.xlane.xlu0 %2035 }
 0x5ac   : > { %v2039_v33 = vpop.xlane.xlu1 %2038 }
 0x5b2   : > { %v2048_v41 = vpop.permute.xlu0 %2047 }
 0x5b3   : > { %v2050_v13 = vadd.f32 %v2048_v41, %v2018_v57  ;;  %v2051_v38 = vadd.f32 %v2048_v41, %v2021_v8  ;;  %v2052_v22 = vadd.f32 %v2048_v41, %v2024_v12  ;;  %v2053_v52 = vadd.f32 %v2048_v41, %v2027_v47 }
 0x5b4   : > { %v2054_v54 = vadd.f32 %v2048_v41, %v2030_v40  ;;  %v2055_v53 = vadd.f32 %v2048_v41, %v2033_v51  ;;  %v2056_v36 = vadd.f32 %v2048_v41, %v2036_v49  ;;  %v2057_v16 = vadd.f32 %v2048_v41, %v2039_v33 }
 0x5b5   : > { %v2058_v19 = vsel %vm689_vm12, %v2050_v13, -1000.0  ;;  %v2059_v50 = vsel %vm690_vm13, %v2051_v38, -1000.0  ;;  %v2060_v56 = vsel %vm691_vm14, %v2052_v22, -1000.0  ;;  %v2061_v18 = vsel %vm3816_vm2, %v2053_v52, -1000.0 }
 0x5b6   : > { %v2062_v29 = vsel %vm3817_vm11, %v2054_v54, -1000.0  ;;  %v2077_v26 = vrot.slane %v2058_v19, %v3369_v4  ;;  %v2081_v31 = vrot.slane %v2059_v50, %v3369_v4  ;;  %v2085_v34 = vrot.slane %v2060_v56, %v3369_v4 }
 0x5b7   : > { %vm3818_vm12 = vcmp.gt.f32.partialorder %v3431_v32, 0.0  ;;  %vm3819_vm13 = vcmp.gt.f32.partialorder %v3412_v24, 0.0  ;;  %v2089_v59 = vrot.slane %v2061_v18, %v3369_v4  ;;  %vm3820_vm14 = vcmp.gt.f32.partialorder %v3445_v39, 0.0 }
 0x5b8   : > { %v2063_v7 = vsel %vm3818_vm12, %v2055_v53, -1000.0  ;;  %v2064_v14 = vsel %vm3819_vm13, %v2056_v36, -1000.0  ;;  %v2106_v23 = vsel %vm1533_vm4, %v2081_v31, %v2077_v26  ;;  %v2065_v17 = vsel %vm3820_vm14, %v2057_v16, -1000.0 }
 0x5b9   : > { %v2093_v15 = vrot.slane %v2062_v29, %v3369_v4  ;;  %v2107_v60 = vsel %vm1535_vm0, %v2085_v34, %v2106_v23  ;;  %v2097_v62 = vrot.slane %v2063_v7, %v3369_v4  ;;  %v2101_v32 = vrot.slane %v2064_v14, %v3369_v4 }
 0x5ba   : > { %v2108_v2 = vsel %vm1537_vm5, %v2089_v59, %v2107_v60  ;;  %v2105_v25 = vrot.slane %v2065_v17, %v3369_v4  ;;  %v2144_v52 = vsub.s32 6, %v3224_v3  ;;  %v2443_v3 = vld [vmem:[%s3794_s16] sm:$0xff] }
 0x5bb   : > { %v2109_v24 = vsel %vm1539_vm6, %v2093_v15, %v2108_v2 }
 0x5bc   : > { %v2110_v1 = vsel %vm1541_vm7, %v2097_v62, %v2109_v24 }
 0x5bd   : > { %v2111_v27 = vsel %vm1543_vm8, %v2101_v32, %v2110_v1 }
 0x5be   : > { %v2112_v39 = vsel %vm1545_vm10, %v2105_v25, %v2111_v27 }
 0x5bf   : > { %v2114_v45 = vsel %vm3821_vm3, %v2112_v39, -inf }
 0x5c0   : > { %2115 = vmax.xlane.f32.xlu1 %v2114_v45 }
 0x64d   : > { %v2116_v58 = vpop.xlane.xlu1 %2115 }
 0x64e   : > { %v2121_v20 = vrot.slane %v2116_v58, %v3232_v5  ;;  %v2125_v21 = vrot.slane %v2116_v58, %v3235_v6  ;;  %v2149_v28 = vrot.slane %v2116_v58, %v2148_v0  ;;  %v2129_v35 = vrot.slane %v2116_v58, %v3242_v9 }
 0x64f   : > { %v2133_v47 = vrot.slane %v2116_v58, %v3245_v10  ;;  %v2137_v13 = vrot.slane %v2116_v58, %v3294_v42  ;;  %v2141_v54 = vrot.slane %v2116_v58, %v3297_v43 }
 0x650   : > { %v2158_v57 = vsub.f32 %v2058_v19, %v2121_v20  ;;  %v2159_v12 = vsub.f32 %v2059_v50, %v2125_v21  ;;  %v2165_v40 = vsub.f32 %v2065_v17, %v2149_v28  ;;  %v2160_v49 = vsub.f32 %v2060_v56, %v2129_v35 }
 0x651   : > { %v2161_v38 = vsub.f32 %v2061_v18, %v2133_v47  ;;  %v2162_v53 = vsub.f32 %v2062_v29, %v2137_v13  ;;  %v2145_v19 = vrot.slane %v2116_v58, %v2144_v52  ;;  %v2163_v50 = vsub.f32 %v2063_v7, %v2141_v54 }
 0x652   : > { %v2166_v8 = vmul.f32 1.442695, %v2158_v57  ;;  %v2168_v51 = vmul.f32 1.442695, %v2159_v12  ;;  %v2180_v41 = vmul.f32 1.442695, %v2165_v40 }
 0x653   : > { %v2170_v22 = vmul.f32 1.442695, %v2160_v49  ;;  %v2172_v33 = vmul.f32 1.442695, %v2161_v38  ;;  %v2174_v56 = vmul.f32 1.442695, %v2162_v53  ;;  %v2164_v18 = vsub.f32 %v2064_v14, %v2145_v19 }
 0x654   : > { %3057 = vpow2.f32 %v2166_v8  ;;  %v2176_v26 = vmul.f32 1.442695, %v2163_v50 }
 0x655   : > { %3059 = vpow2.f32 %v2168_v51  ;;  %v2178_v34 = vmul.f32 1.442695, %v2164_v18 }
 0x656   : > { %3061 = vpow2.f32 %v2180_v41 }
 0x657   : > { %3063 = vpow2.f32 %v2170_v22 }
 0x658   : > { %3065 = vpow2.f32 %v2172_v33 }
 0x659   : > { %3067 = vpow2.f32 %v2174_v56 }
 0x65a   : > { %3069 = vpow2.f32 %v2176_v26 }
 0x65b   : > { %3071 = vpow2.f32 %v2178_v34 }
 0x65e   : > { %v3660_v36 = vpop.eup %3057 }
 0x65f   : > { %2191 = vperm.xlu1 %3024, %v3660_v36   ;;  %v3060_v16 = vpop.eup %3059 }
 0x660   : > { %v3665_v31 = vpop.eup %3061 }
 0x661   : > { %v3064_v29 = vpop.eup %3063  ;;  %2212 = vperm.xlu0 %3023, %v3665_v31  }
 0x662   : > { %v3066_v59 = vpop.eup %3065 }
 0x663   : > { %2194 = vperm.xlu1 %3024, %v3060_v16   ;;  %v3068_v23 = vpop.eup %3067 }
 0x664   : > { %v3070_v7 = vpop.eup %3069 }
 0x665   : > { %v3668_v17 = vpop.eup %3071 }
 0x667   : > { %2197 = vperm.xlu1 %3024, %v3064_v29  }
 0x66b   : > { %2200 = vperm.xlu1 %3024, %v3066_v59  }
 0x66f   : > { %2203 = vperm.xlu1 %3024, %v3068_v23  }
 0x673   : > { %2206 = vperm.xlu1 %3024, %v3070_v7  }
 0x677   : > { %2209 = vperm.xlu1 %3024, %v3668_v17  }
 0x6de   : > { %v2192_v14 = vpop.permute.xlu1 %2191 }
 0x6df   : > { %v2217_v25 = vrot.slane %v2192_v14, %v3369_v4 }
 0x6e0   : > { %v2213_v20 = vpop.permute.xlu0 %2212 }
 0x6e1   : > { %v2245_v8 = vrot.slane %v2213_v20, %v3369_v4 }
 0x6e2   : > { %v2195_v15 = vpop.permute.xlu1 %2194 }
 0x6e3   : > { %v2221_v32 = vrot.slane %v2195_v15, %v3369_v4 }
 0x6e5   : > { %v2246_v45 = vsel %vm1533_vm4, %v2221_v32, %v2217_v25  ;;  %v2562_v32 = vld [vmem:[%s3796_s18 + $0x8] sm:$0xff] }
 0x6e6   : > { %v2198_v60 = vpop.permute.xlu1 %2197 }
 0x6e7   : > { %v2225_v24 = vrot.slane %v2198_v60, %v3369_v4 }
 0x6e9   : > { %v2247_v21 = vsel %vm1535_vm0, %v2225_v24, %v2246_v45 }
 0x6ea   : > { %v2201_v62 = vpop.permute.xlu1 %2200 }
 0x6eb   : > { %v2229_v1 = vrot.slane %v2201_v62, %v3369_v4 }
 0x6ed   : > { %v2248_v28 = vsel %vm1537_vm5, %v2229_v1, %v2247_v21 }
 0x6ee   : > { %v2204_v2 = vpop.permute.xlu1 %2203 }
 0x6ef   : > { %v2233_v39 = vrot.slane %v2204_v2, %v3369_v4 }
 0x6f1   : > { %v2249_v57 = vsel %vm1539_vm6, %v2233_v39, %v2248_v28 }
 0x6f2   : > { %v2207_v27 = vpop.permute.xlu1 %2206 }
 0x6f3   : > { %v2237_v58 = vrot.slane %v2207_v27, %v3369_v4 }
 0x6f5   : > { %v2250_v40 = vsel %vm1541_vm7, %v2237_v58, %v2249_v57 }
 0x6f6   : > { %v2210_v35 = vpop.permute.xlu1 %2209 }
 0x6f7   : > { %v2241_v12 = vrot.slane %v2210_v35, %v3369_v4 }
 0x6f9   : > { %v2251_v47 = vsel %vm1543_vm8, %v2241_v12, %v2250_v40 }
 0x6fa   : > { %v2252_v49 = vsel %vm1545_vm10, %v2245_v8, %v2251_v47 }
 0x6fb   : > { %v2254_v51 = vsel %vm3822_vm9, %v2252_v49, 0.0 }
 0x6fc   : > { %2255 = vadd.xlane.f32.xlu1 %v2254_v51 }
 0x789   : > { %v2256_v41 = vpop.xlane.xlu1 %2255 }
 0x78a   : > { %v2265_v13 = vrot.slane %v2256_v41, %v3235_v6  ;;  %v2269_v38 = vrot.slane %v2256_v41, %v3242_v9  ;;  %v2261_v22 = vrot.slane %v2256_v41, %v3232_v5  ;;  %v2273_v4 = vrot.slane %v2256_v41, %v3245_v10 }
 0x78b   : > { %v2277_v53 = vrot.slane %v2256_v41, %v3294_v42  ;;  %v2281_v50 = vrot.slane %v2256_v41, %v3297_v43  ;;  %v2285_v26 = vrot.slane %v2256_v41, %v2144_v52  ;;  %v2289_v42 = vrot.slane %v2256_v41, %v2148_v0  ;;  %v2444_v0 = vld [vmem:[%s3794_s16 + $0x8] sm:$0xff] }
 0x78c   : > { %3073 = vrcp.f32 %v2265_v13 }
 0x78d   : > { %3075 = vrcp.f32 %v2269_v38 }
 0x78e   : > { %3077 = vrcp.f32 %v2261_v22 }
 0x78f   : > { %3079 = vrcp.f32 %v2273_v4 }
 0x790   : > { %3081 = vrcp.f32 %v2277_v53 }
 0x791   : > { %3083 = vrcp.f32 %v2281_v50 }
 0x792   : > { %3085 = vrcp.f32 %v2285_v26 }
 0x793   : > { %3087 = vrcp.f32 %v2289_v42 }
 0x796   : > { %v3074_v54 = vpop.eup %3073 }
 0x797   : > { %v2301_v33 = vmul.f32 %v3074_v54, %v3060_v16  ;;  %v3076_v19 = vpop.eup %3075 }
 0x798   : > { %v2303_v56 = vmul.f32 %v3076_v19, %v3064_v29  ;;  %v3078_v18 = vpop.eup %3077 }
 0x799   : > { %2321 = vperm.xlu0 %3023, %v2301_v33   ;;  %v2299_v34 = vmul.f32 %v3078_v18, %v3660_v36  ;;  %v3080_v14 = vpop.eup %3079 }
 0x79a   : > { %v2305_v16 = vmul.f32 %v3080_v14, %v3066_v59  ;;  %v3082_v15 = vpop.eup %3081  ;;  %v2445_v59 = vld [vmem:[%s3794_s16 + $0x10] sm:$0xff] }
 0x79b   : > { %v2307_v43 = vmul.f32 %v3082_v15, %v3068_v23  ;;  %v3084_v29 = vpop.eup %3083  ;;  %v2997_v23 = vpack.c.bf16 %v2444_v0, %v2443_v3 }
 0x79c   : > { %v2309_v60 = vmul.f32 %v3084_v29, %v3070_v7  ;;  %v3086_v62 = vpop.eup %3085  ;;  %v2446_v7 = vld [vmem:[%s3794_s16 + $0x18] sm:$0xff] }
 0x79d   : > { %2326 = vperm.xlu0 %3023, %v2303_v56   ;;  %v2311_v52 = vmul.f32 %v3086_v62, %v3668_v17  ;;  %v3088_v2 = vpop.eup %3087  ;;  %2998 = vmatpush3.bf16.msra.mxu1 %v2997_v23  ;;  %v2561_v17 = vld [vmem:[%s3796_s18] sm:$0xff] }
 0x79e   : > { %v2313_v36 = vmul.f32 %v3088_v2, %v3665_v31  ;;  %v3000_v31 = vpack.c.bf16 %v2446_v7, %v2445_v59  ;;  %2999 = vmatprep.subr.bf16.mxu1 %v3098_v55  ;;  %v3003_v24 = vpack.c.bf16 %v2562_v32, %v2561_v17 }
 0x7a0   : > { %3004 = vmatpush3.bf16.msra.mxu0 %v3003_v24 }
 0x7a1   : > { %2316 = vperm.xlu0 %3023, %v2299_v34   ;;  %3001 = vmatpush3.bf16.msra.mxu1 %v3000_v31 }
 0x7a2   : > { %3005 = vmatprep.subr.bf16.mxu0 %v3098_v55 }
 0x7a5   : > { %2331 = vperm.xlu0 %3023, %v2305_v16  }
 0x7a9   : > { %2336 = vperm.xlu0 %3023, %v2307_v43  }
 0x7ad   : > { %2341 = vperm.xlu0 %3023, %v2309_v60  }
 0x7b1   : > { %2346 = vperm.xlu0 %3023, %v2311_v52  }
 0x7b5   : > { %2351 = vperm.xlu0 %3023, %v2313_v36  }
 0x818   : > { %v2322_v25 = vpop.permute.xlu0 %2321 }
 0x819   : > { %v2355_v1 = vmul.f32 %v2322_v25, %v3511_v61 }
 0x81b   : > { %v2369_v39 = vsel %vm1323_vm1, %v2355_v1, 0.0 }
 0x81c   : > { %v2327_v27 = vpop.permute.xlu0 %2326  ;;  %v2370_v58 = vrot.slane %v2369_v39, 4 }
 0x81d   : > { %v2356_v45 = vmul.f32 %v2327_v27, %v3535_v48 }
 0x81e   : > { %v2371_v12 = vadd.f32 %v2370_v58, %v2369_v39 }
 0x81f   : > { %v2376_v20 = vsel %vm1323_vm1, %v2356_v45, 0.0 }
 0x820   : > { %v2317_v21 = vpop.permute.xlu0 %2316  ;;  %v2377_v35 = vrot.slane %v2376_v20, 4  ;;  %v2372_v51 = vrot.slane %v2371_v12, 2 }
 0x821   : > { %v2354_v28 = vmul.f32 %v2317_v21, %v3517_v11 }
 0x822   : > { %v2378_v47 = vadd.f32 %v2377_v35, %v2376_v20  ;;  %v2373_v54 = vadd.f32 %v2372_v51, %v2371_v12 }
 0x823   : > { %v2362_v57 = vsel %vm1323_vm1, %v2354_v28, 0.0 }
 0x824   : > { %v2363_v8 = vrot.slane %v2362_v57, 4  ;;  %v2332_v55 = vpop.permute.xlu0 %2331  ;;  %v2379_v11 = vrot.slane %v2378_v47, 2  ;;  %v2374_v14 = vrot.slane %v2373_v54, 1 }
 0x825   : > { %v2357_v40 = vmul.f32 %v2332_v55, %v3531_v44 }
 0x826   : > { %v2364_v61 = vadd.f32 %v2363_v8, %v2362_v57  ;;  %v2380_v18 = vadd.f32 %v2379_v11, %v2378_v47  ;;  %v2375_v3 = vadd.f32 %v2374_v14, %v2373_v54 }
 0x827   : > { %v2383_v49 = vsel %vm1323_vm1, %v2357_v40, 0.0 }
 0x828   : > { %v2384_v48 = vrot.slane %v2383_v49, 4  ;;  %v2337_v41 = vpop.permute.xlu0 %2336  ;;  %v2365_v13 = vrot.slane %v2364_v61, 2 }
 0x829   : > { %v2358_v38 = vmul.f32 %v2337_v41, %v3549_v63  ;;  %v3735_v63 = vld [vmem:[%s3793_s15] sm:$0xf] }
 0x82a   : > { %v2385_v22 = vadd.f32 %v2384_v48, %v2383_v49  ;;  %v2366_v19 = vadd.f32 %v2365_v13, %v2364_v61  ;;  %v2422_v36 = vrot.slane %v3735_v63, %v3232_v5  ;;  %v2434_v25 = vrot.slane %v3735_v63, %v3235_v6 }
 0x82b   : > { %v2390_v4 = vsel %vm1323_vm1, %v2358_v38, 0.0 }
 0x82c   : > { %v2386_v53 = vrot.slane %v2385_v22, 2  ;;  %v2342_v33 = vpop.permute.xlu0 %2341  ;;  %v2391_v50 = vrot.slane %v2390_v4, 4  ;;  %v2367_v15 = vrot.slane %v2366_v19, 1  ;;  %v2424_v45 = vmul.f32 %v2422_v36, %v2375_v3 }
 0x82d   : > { %v2359_v44 = vmul.f32 %v2342_v33, %v3557_v37  ;;  %v2381_v37 = vrot.slane %v2380_v18, 1 }
 0x82e   : > { %v2387_v56 = vadd.f32 %v2386_v53, %v2385_v22  ;;  %v2392_v26 = vadd.f32 %v2391_v50, %v2390_v4  ;;  %v2368_v7 = vadd.f32 %v2367_v15, %v2366_v19  ;;  %v2436_v55 = vadd.f32 %v2434_v25, %v2424_v45 }
 0x82f   : > { %v2397_v34 = vsel %vm1323_vm1, %v2359_v44, 0.0  ;;  %v2382_v1 = vadd.f32 %v2381_v37, %v2380_v18  ;;  %v2564_v37 = vld [vmem:[%s3796_s18 + $0x18] sm:$0xff] }
 0x830   : > { %v2398_v42 = vrot.slane %v2397_v34, 4  ;;  %v2347_v16 = vpop.permute.xlu0 %2346  ;;  %v2393_v43 = vrot.slane %v2392_v26, 2  ;;  %v2388_v60 = vrot.slane %v2387_v56, 1  ;;  %v2423_v21 = vmul.f32 %v2422_v36, %v2368_v7 }
 0x831   : > { %v2360_v29 = vmul.f32 %v2347_v16, %v3563_v46  ;;  %v2462_v38 = vrot.slane %v2436_v55, 7  ;;  %v2559_v7 = vrot.slane %v3735_v63, %v3245_v10 }
 0x832   : > { %v2399_v62 = vadd.f32 %v2398_v42, %v2397_v34  ;;  %v2394_v52 = vadd.f32 %v2393_v43, %v2392_v26  ;;  %v2389_v32 = vadd.f32 %v2388_v60, %v2387_v56  ;;  %v2435_v6 = vadd.f32 %v2434_v25, %v2423_v21 }
 0x833   : > { %v2404_v2 = vsel %vm1323_vm1, %v2360_v29, 0.0 }
 0x834   : > { %v2400_v0 = vrot.slane %v2399_v62, 2  ;;  %v2405_v59 = vrot.slane %v2404_v2, 4  ;;  %v2352_v23 = vpop.permute.xlu0 %2351  ;;  %v2395_v31 = vrot.slane %v2394_v52, 1  ;;  %v2426_v28 = vmul.f32 %v2422_v36, %v2389_v32 }
 0x835   : > { %v2361_v17 = vmul.f32 %v2352_v23, %v3575_v30  ;;  %v2425_v30 = vmul.f32 %v2422_v36, %v2382_v1  ;;  %v2463_v54 = vsel %vm1533_vm4, %v2462_v38, %v2435_v6 }
 0x836   : > { %v2401_v24 = vadd.f32 %v2400_v0, %v2399_v62  ;;  %v2406_v46 = vadd.f32 %v2405_v59, %v2404_v2  ;;  %v2396_v27 = vadd.f32 %v2395_v31, %v2394_v52  ;;  %v2438_v49 = vadd.f32 %v2434_v25, %v2426_v28  ;;  %v2563_v62 = vld [vmem:[%s3796_s18 + $0x10] sm:$0xff]  ;;  %v2773_v2 = vld [vmem:[%s3795_s17] ss:$0 sm:$0xff] }
 0x837   : > { %v2411_v39 = vsel %vm1323_vm1, %v2361_v17, 0.0  ;;  %v2437_v41 = vadd.f32 %v2434_v25, %v2425_v30  ;;  %v3006_v52 = vpack.c.bf16 %v2564_v37, %v2563_v62  ;;  %v2554_v59 = vrot.slane %v3735_v63, %v3242_v9 }
 0x838   : > { %v2402_v5 = vrot.slane %v2401_v24, 1  ;;  %v2407_v58 = vrot.slane %v2406_v46, 2  ;;  %v2412_v20 = vrot.slane %v2411_v39, 4  ;;  %v2427_v8 = vmul.f32 %v2422_v36, %v2396_v27 }
 0x839   : > { %v2466_v53 = vrot.slane %v2438_v49, 5  ;;  %v2464_v50 = vrot.slane %v2437_v41, 6  ;;  %3007 = vmatpush3.bf16.msra.mxu0 %v3006_v52 }
 0x83a   : > { %v2403_v35 = vadd.f32 %v2402_v5, %v2401_v24  ;;  %v2408_v57 = vadd.f32 %v2407_v58, %v2406_v46  ;;  %v2413_v12 = vadd.f32 %v2412_v20, %v2411_v39  ;;  %v2439_v13 = vadd.f32 %v2434_v25, %v2427_v8  ;;  %v2775_v24 = vld [vmem:[%s3797_s19] ss:$0 sm:$0xff] }
 0x83b   : > { %v2465_v34 = vsel %vm1535_vm0, %v2464_v50, %v2463_v54  ;;  %vm2645_vm0 = vcmask 31744  }
 0x83c   : > { %v2428_v40 = vmul.f32 %v2422_v36, %v2403_v35  ;;  %v2409_v61 = vrot.slane %v2408_v57, 1  ;;  %v2414_v47 = vrot.slane %v2413_v12, 2  ;;  %v2468_v44 = vrot.slane %v2439_v13, 4 }
 0x83d   : > { %v2467_v42 = vsel %vm1537_vm5, %v2466_v53, %v2465_v34 }
 0x83e   : > { %v2410_v51 = vadd.f32 %v2409_v61, %v2408_v57  ;;  %v2415_v48 = vadd.f32 %v2414_v47, %v2413_v12  ;;  %v2440_v22 = vadd.f32 %v2434_v25, %v2428_v40  ;;  %v2469_v16 = vsel %vm1539_vm6, %v2468_v44, %v2467_v42 }
 0x840   : > { %v2429_v11 = vmul.f32 %v2422_v36, %v2410_v51  ;;  %v2416_v4 = vrot.slane %v2415_v48, 1  ;;  %v2470_v56 = vrot.slane %v2440_v22, 3 }
 0x842   : > { %v2441_v33 = vadd.f32 %v2434_v25, %v2429_v11  ;;  %v2417_v19 = vadd.f32 %v2416_v4, %v2415_v48  ;;  %v2471_v15 = vsel %vm1541_vm7, %v2470_v56, %v2469_v16 }
 0x844   : > { %v2430_v18 = vmul.f32 %v2422_v36, %v2417_v19  ;;  %v2472_v26 = vrot.slane %v2441_v33, 2 }
 0x846   : > { %v2442_v14 = vadd.f32 %v2434_v25, %v2430_v18  ;;  %v2473_v29 = vsel %vm1543_vm8, %v2472_v26, %v2471_v15 }
 0x848   : > { %v2474_v43 = vrot.slane %v2442_v14, 1 }
 0x84a   : > { %v2475_v60 = vsel %vm1545_vm10, %v2474_v43, %v2473_v29 }
 0x84b   : > { %2953 = vmatmul.mubr.msk.f32.vlgmr.msra.gmra.mrb[20].mxu1 %vm1323_vm1, %v2475_v60 }
 0x91e   : > { %v2544_v36 = vpop.f32.mrb[20].mxu1 }
 0x91f   : > { %v2545_v3 = vadd.f32 %v2773_v2, %v2544_v36  ;;  %v2954_v0 = vpop.f32.mrb[21].mxu1 }
 0x921   : > { %vm2548_vm4 = vcmp.ge.f32.partialorder %v2545_v3, 0.0  ;;  %v2549_v23 = vmul.f32 0.01, %v2545_v3 }
 0x923   : > { %v2550_v31 = vsel %vm2548_vm4, %v2545_v3, %v2549_v23 }
 0x924   : > { %v2555_v17 = vmul.f32 %v2554_v59, %v2550_v31 }
 0x926   : > { %v2560_v32 = vadd.f32 %v2559_v7, %v2555_v17 }
 0x928   : > { %2964 = vmatmul.mubr.msk.f32.vlgmr.msra.gmra.mrb[22].mxu0 %vm1323_vm1, %v2560_v32 }
 0x9fb   : > { %v2641_v9 = vpop.f32.mrb[22].mxu0 }
 0x9fc   : > { %v2642_v46 = vadd.f32 %v2775_v24, %v2641_v9  ;;  %v2965_v10 = vpop.f32.mrb[23].mxu0 }
 0x9fe   : > { %2646 = vst.msk [vmem:[%s631_s26] sm:$0xff] %vm2645_vm0, %v2642_v46 }
 0x9ff PF: > { %s32_s23 = sadd.s32 1, %s3095_s23  }
 0xa00   : > { %p29_p5 = scmp.ge.s32.totalorder %s32_s23, 4  }
 0xa02   :  { %31 = sbr.rel (!%p29_p5) target bundleno = 6 (0x6), region = 130 }

</bundles_post_ra>
